<compile_context>
chip_gen: v6e
topology: v6e:2x2x1
jax: 0.10.0
libtpu: 0.0.40
codegen_flags: <defaults>
</compile_context>

<pallas_src>
import functools

import jax
import jax.numpy as jnp
import numpy as np
from jax.experimental import pallas as pl
from jax.experimental.pallas import tpu as pltpu


def _round_up(x, m):
    return ((x + m - 1) // m) * m


# ---------------------------------------------------------------------------
# Kernels
# ---------------------------------------------------------------------------
def _conv_taps(xu, w_ref, wu, l_out):
    """4x4 VALID conv on the (flattened) upsampled image as 16 accumulating matmuls.

    xu:    (Cin, L_xu) f32 value; flattened upsampled image with row pitch `wu` (zero padded).
    w_ref: (16, Cout, Cin) ref; w_ref[kh*4+kw] == w[:, :, kh, kw].
    Output lane m encodes (ho, wo) as m = ho*wu + wo (columns wo >= Wo are junk, masked later).
    """
    cout = w_ref.shape[1]
    acc = jnp.zeros((cout, l_out), dtype=jnp.float32)
    for kh in range(4):
        for kw in range(4):
            t = kh * 4 + kw
            s = kh * wu + kw                       # static lane offset of this tap's shifted view
            acc = acc + jnp.dot(w_ref[t], xu[:, s:s + l_out],
                                preferred_element_type=jnp.float32)
    return acc


def _conv_stats_kernel(xu_ref, w_ref, mask_ref, conv_ref, sum_ref, ssq_ref, *, wu, l_out):
    # BN path: no bias (it cancels against the mean subtraction -> exact).
    xu = xu_ref[0]                                  # (Cin, L_xu)
    acc = _conv_taps(xu, w_ref, wu, l_out)          # (Cout, L) f32, lane-dense
    masked = acc * mask_ref[...]                    # zero junk columns / tail so stats stay exact
    conv_ref[0] = masked
    # fused BN statistics: full-lane reductions of the resident tile (per-image partials)
    sum_ref[0] = jnp.sum(masked, axis=-1, keepdims=True)
    ssq_ref[0] = jnp.sum(masked * masked, axis=-1, keepdims=True)


def _conv_bias_kernel(xu_ref, w_ref, b_ref, conv_ref, *, wu, l_out):
    # is_out path: conv + bias, no BN.
    xu = xu_ref[0]
    acc = _conv_taps(xu, w_ref, wu, l_out)
    conv_ref[0] = acc + b_ref[...]                  # (Cout, 1) broadcast along lanes


def _affine_kernel(x_ref, scale_ref, shift_ref, o_ref):
    # Lightweight BN-apply pass: y = x * scale + shift (per-channel scalars, lane-dense).
    o_ref[0] = x_ref[0] * scale_ref[...] + shift_ref[...]


# ---------------------------------------------------------------------------
# Wrapper mirroring `up.forward`
# ---------------------------------------------------------------------------
def up_forward(x1, x2, w, b, gamma, beta, is_out=False, eps=1e-5):
    """x1: (N, Cin, H, W) f32 NCHW; x2: (N, C2, Ho, Wo) NCHW (ignored if is_out).
    w: (Cout, Cin, 4, 4) OIHW conv weight; b: (Cout,); gamma/beta: (Cout,)."""
    N, Cin, H, W = x1.shape
    Cout = w.shape[0]
    Hu, Wu = 2 * H, 2 * W
    Ho, Wo = Hu - 3, Wu - 3                          # 4x4 VALID conv on the upsampled image

    # nearest 2x upsample (cheap glue: 4x a tiny input; the 16x im2col blob is gone)
    xu = jnp.repeat(jnp.repeat(x1, 2, axis=2), 2, axis=3)            # (N, Cin, Hu, Wu)

    L_out = _round_up(Ho * Wu, 128)                                  # lane-dense flat output length
    L_xu = _round_up(3 * Wu + 3 + L_out, 128)                        # covers the largest tap shift
    xu_flat = jnp.pad(xu.reshape(N, Cin, Hu * Wu),
                      ((0, 0), (0, 0), (0, L_xu - Hu * Wu)))         # (N, Cin, L_xu)

    # tap-major weights: w_taps[kh*4+kw] = w[:, :, kh, kw] -> (16, Cout, Cin)
    w_taps = jnp.transpose(w, (2, 3, 0, 1)).reshape(16, Cout, Cin).astype(jnp.float32)

    grid = (N,)
    xu_spec = pl.BlockSpec((1, Cin, L_xu), lambda n: (n, 0, 0))
    w_spec = pl.BlockSpec((16, Cout, Cin), lambda n: (0, 0, 0))
    out_spec = pl.BlockSpec((1, Cout, L_out), lambda n: (n, 0, 0))
    chan_spec = pl.BlockSpec((Cout, 1), lambda n: (0, 0))
    params = pltpu.CompilerParams(dimension_semantics=("parallel",))

    if is_out:
        y_flat = pl.pallas_call(
            functools.partial(_conv_bias_kernel, wu=Wu, l_out=L_out),
            out_shape=jax.ShapeDtypeStruct((N, Cout, L_out), jnp.float32),
            grid=grid,
            in_specs=[xu_spec, w_spec, chan_spec],
            out_specs=out_spec,
            compiler_params=params,
        )(xu_flat, w_taps, b.reshape(Cout, 1).astype(jnp.float32))
    else:
        # lane m is a real output position iff m < Ho*Wu and (m mod Wu) < Wo
        m_idx = np.arange(L_out)
        mask = ((m_idx < Ho * Wu) & (m_idx % Wu < Wo)).astype(np.float32).reshape(1, L_out)
        mask = jnp.asarray(mask)

        conv, psum, psqs = pl.pallas_call(
            functools.partial(_conv_stats_kernel, wu=Wu, l_out=L_out),
            out_shape=(
                jax.ShapeDtypeStruct((N, Cout, L_out), jnp.float32),
                jax.ShapeDtypeStruct((N, Cout, 1), jnp.float32),
                jax.ShapeDtypeStruct((N, Cout, 1), jnp.float32),
            ),
            grid=grid,
            in_specs=[xu_spec, w_spec, pl.BlockSpec((1, L_out), lambda n: (0, 0))],
            out_specs=(out_spec,
                       pl.BlockSpec((1, Cout, 1), lambda n: (n, 0, 0)),
                       pl.BlockSpec((1, Cout, 1), lambda n: (n, 0, 0))),
            compiler_params=params,
        )(xu_flat, w_taps, mask)

        # Training-mode BatchNorm2d statistics over the valid positions (biased variance).
        cnt = jnp.float32(N * Ho * Wo)
        mean = jnp.sum(psum, axis=0) / cnt                            # (Cout, 1), bias-free (cancels)
        var = jnp.sum(psqs, axis=0) / cnt - mean * mean
        inv = jax.lax.rsqrt(var + eps)
        scale = gamma.reshape(Cout, 1).astype(jnp.float32) * inv
        shift = beta.reshape(Cout, 1).astype(jnp.float32) - mean * scale

        y_flat = pl.pallas_call(
            _affine_kernel,
            out_shape=jax.ShapeDtypeStruct((N, Cout, L_out), jnp.float32),
            grid=grid,
            in_specs=[out_spec, chan_spec, chan_spec],
            out_specs=out_spec,
            compiler_params=params,
        )(conv, scale, shift)

    # unpack flat (row pitch = Wu) layout back to NCHW and drop junk columns / tail
    y = y_flat[:, :, :Ho * Wu].reshape(N, Cout, Ho, Wu)[:, :, :, :Wo]

    if is_out:
        return y
    return jnp.concatenate([y, x2], axis=1)                           # torch.cat(dim=1)


# ---------------------------------------------------------------------------
# Pure-JAX reference (sanity check only)
# ---------------------------------------------------------------------------
def up_forward_ref(x1, x2, w, b, gamma, beta, is_out=False, eps=1e-5):
    xu = jnp.repeat(jnp.repeat(x1, 2, axis=2), 2, axis=3)
    conv = jax.lax.conv_general_dilated(
        xu, w, window_strides=(1, 1), padding="VALID",
        dimension_numbers=("NCHW", "OIHW", "NCHW"),
        precision=jax.lax.Precision.HIGHEST,
    ) + b[None, :, None, None]
    if is_out:
        return conv
    mean = conv.mean(axis=(0, 2, 3), keepdims=True)
    var = ((conv - mean) ** 2).mean(axis=(0, 2, 3), keepdims=True)
    bn = (conv - mean) * jax.lax.rsqrt(var + eps)
    bn = bn * gamma[None, :, None, None] + beta[None, :, None, None]
    return jnp.concatenate([bn, x2], axis=1)


if __name__ == "__main__":
    key = jax.random.PRNGKey(0)
    k1, k2, k3, k4 = jax.random.split(key, 4)

    N, Cin, Cout, H, W = 2, 4, 8, 16, 16
    Ho = Wo = 2 * H - 3                                               # 29
    C2 = 8

    x1 = jax.random.normal(k1, (N, Cin, H, W), dtype=jnp.float32)
    x2 = jax.random.normal(k2, (N, C2, Ho, Wo), dtype=jnp.float32)

    # deterministic synthetic parameters (shapes from the module's __init__)
    w = 0.1 * jax.random.normal(k3, (Cout, Cin, 4, 4), dtype=jnp.float32)
    b = 0.1 * jax.random.normal(k4, (Cout,), dtype=jnp.float32)
    gamma = jnp.ones((Cout,), dtype=jnp.float32)                      # BatchNorm2d default init
    beta = jnp.zeros((Cout,), dtype=jnp.float32)

    # BN branch (is_out=False)
    out = jax.block_until_ready(up_forward(x1, x2, w, b, gamma, beta, is_out=False))
    ref = jax.block_until_ready(up_forward_ref(x1, x2, w, b, gamma, beta, is_out=False))
    assert out.shape == (N, Cout + C2, Ho, Wo), out.shape
    assert np.allclose(np.asarray(out), np.asarray(ref), rtol=5e-2, atol=5e-2)

    # output branch (is_out=True)
    out2 = jax.block_until_ready(up_forward(x1, None, w, b, gamma, beta, is_out=True))
    ref2 = jax.block_until_ready(up_forward_ref(x1, None, w, b, gamma, beta, is_out=True))
    assert out2.shape == (N, Cout, Ho, Wo), out2.shape
    assert np.allclose(np.asarray(out2), np.asarray(ref2), rtol=5e-2, atol=5e-2)

    print("KERNEL_OK")
</pallas_src>

<mosaic_0001>
module attributes {stable_mosaic.version = 11 : i64} {
  func.func @_conv_stats_kernel(%arg0: i32, %arg1: memref<1x4x1152xf32, #tpu.memory_space<vmem>>, %arg2: memref<16x8x4xf32, #tpu.memory_space<vmem>>, %arg3: memref<1x1024xf32, #tpu.memory_space<vmem>>, %arg4: memref<1x8x1024xf32, #tpu.memory_space<vmem>>, %arg5: memref<1x8x1xf32, #tpu.memory_space<vmem>>, %arg6: memref<1x8x1xf32, #tpu.memory_space<vmem>>) attributes {dimension_semantics = [#tpu.dimension_semantics<parallel>], iteration_bounds = array<i64: 2>, scalar_prefetch = 0 : i64, scratch_operands = 0 : i64, tpu.core_type = #tpu.core_type<tc>, window_params = [{transform_indices = @transform_0, window_bounds = array<i64: 1, 4, 1152>}, {pipeline_mode = #tpu.pipeline_mode<synchronous>, transform_indices = @transform_1, window_bounds = array<i64: 16, 8, 4>}, {pipeline_mode = #tpu.pipeline_mode<synchronous>, transform_indices = @transform_2, window_bounds = array<i64: 1, 1024>}, {transform_indices = @transform_3, window_bounds = array<i64: 1, 8, 1024>}, {transform_indices = @transform_4, window_bounds = array<i64: 1, 8, 1>}, {transform_indices = @transform_5, window_bounds = array<i64: 1, 8, 1>}]} {
    %c0 = arith.constant 0 : index
    %c0_0 = arith.constant 0 : index
    %c0_1 = arith.constant 0 : index
    %0 = vector.load %arg1[%c0, %c0_0, %c0_1] : memref<1x4x1152xf32, #tpu.memory_space<vmem>>, vector<1x4x1152xf32>
    %1 = vector.shape_cast %0 : vector<1x4x1152xf32> to vector<4x1152xf32>
    %cst = arith.constant 0.000000e+00 : f32
    %2 = vector.broadcast %cst : f32 to vector<8x1024xf32>
    %c0_2 = arith.constant 0 : index
    %c0_3 = arith.constant 0 : index
    %c0_4 = arith.constant 0 : index
    %3 = vector.load %arg2[%c0_2, %c0_3, %c0_4] : memref<16x8x4xf32, #tpu.memory_space<vmem>>, vector<1x8x4xf32>
    %4 = vector.shape_cast %3 : vector<1x8x4xf32> to vector<8x4xf32>
    %5 = vector.extract_strided_slice %1 {offsets = [0, 0], sizes = [4, 1024], strides = [1, 1]} : vector<4x1152xf32> to vector<4x1024xf32>
    %cst_5 = arith.constant dense<0.000000e+00> : vector<8x1024xf32>
    %6 = tpu.matmul %4, %5, %cst_5 {dimension_numbers = #tpu.dot_dimension_numbers<[1], [0], [0], [1], [0, 0, 1, 1], [], []>} : vector<8x4xf32>, vector<4x1024xf32>, vector<8x1024xf32> -> vector<8x1024xf32>
    %7 = arith.addf %2, %6 : vector<8x1024xf32>
    %c1 = arith.constant 1 : index
    %c0_6 = arith.constant 0 : index
    %c0_7 = arith.constant 0 : index
    %8 = vector.load %arg2[%c1, %c0_6, %c0_7] : memref<16x8x4xf32, #tpu.memory_space<vmem>>, vector<1x8x4xf32>
    %9 = vector.shape_cast %8 : vector<1x8x4xf32> to vector<8x4xf32>
    %10 = vector.extract_strided_slice %1 {offsets = [0, 1], sizes = [4, 1024], strides = [1, 1]} : vector<4x1152xf32> to vector<4x1024xf32>
    %cst_8 = arith.constant dense<0.000000e+00> : vector<8x1024xf32>
    %11 = tpu.matmul %9, %10, %cst_8 {dimension_numbers = #tpu.dot_dimension_numbers<[1], [0], [0], [1], [0, 0, 1, 1], [], []>} : vector<8x4xf32>, vector<4x1024xf32>, vector<8x1024xf32> -> vector<8x1024xf32>
    %12 = arith.addf %7, %11 : vector<8x1024xf32>
    %c2 = arith.constant 2 : index
    %c0_9 = arith.constant 0 : index
    %c0_10 = arith.constant 0 : index
    %13 = vector.load %arg2[%c2, %c0_9, %c0_10] : memref<16x8x4xf32, #tpu.memory_space<vmem>>, vector<1x8x4xf32>
    %14 = vector.shape_cast %13 : vector<1x8x4xf32> to vector<8x4xf32>
    %15 = vector.extract_strided_slice %1 {offsets = [0, 2], sizes = [4, 1024], strides = [1, 1]} : vector<4x1152xf32> to vector<4x1024xf32>
    %cst_11 = arith.constant dense<0.000000e+00> : vector<8x1024xf32>
    %16 = tpu.matmul %14, %15, %cst_11 {dimension_numbers = #tpu.dot_dimension_numbers<[1], [0], [0], [1], [0, 0, 1, 1], [], []>} : vector<8x4xf32>, vector<4x1024xf32>, vector<8x1024xf32> -> vector<8x1024xf32>
    %17 = arith.addf %12, %16 : vector<8x1024xf32>
    %c3 = arith.constant 3 : index
    %c0_12 = arith.constant 0 : index
    %c0_13 = arith.constant 0 : index
    %18 = vector.load %arg2[%c3, %c0_12, %c0_13] : memref<16x8x4xf32, #tpu.memory_space<vmem>>, vector<1x8x4xf32>
    %19 = vector.shape_cast %18 : vector<1x8x4xf32> to vector<8x4xf32>
    %20 = vector.extract_strided_slice %1 {offsets = [0, 3], sizes = [4, 1024], strides = [1, 1]} : vector<4x1152xf32> to vector<4x1024xf32>
    %cst_14 = arith.constant dense<0.000000e+00> : vector<8x1024xf32>
    %21 = tpu.matmul %19, %20, %cst_14 {dimension_numbers = #tpu.dot_dimension_numbers<[1], [0], [0], [1], [0, 0, 1, 1], [], []>} : vector<8x4xf32>, vector<4x1024xf32>, vector<8x1024xf32> -> vector<8x1024xf32>
    %22 = arith.addf %17, %21 : vector<8x1024xf32>
    %c4 = arith.constant 4 : index
    %c0_15 = arith.constant 0 : index
    %c0_16 = arith.constant 0 : index
    %23 = vector.load %arg2[%c4, %c0_15, %c0_16] : memref<16x8x4xf32, #tpu.memory_space<vmem>>, vector<1x8x4xf32>
    %24 = vector.shape_cast %23 : vector<1x8x4xf32> to vector<8x4xf32>
    %25 = vector.extract_strided_slice %1 {offsets = [0, 32], sizes = [4, 1024], strides = [1, 1]} : vector<4x1152xf32> to vector<4x1024xf32>
    %cst_17 = arith.constant dense<0.000000e+00> : vector<8x1024xf32>
    %26 = tpu.matmul %24, %25, %cst_17 {dimension_numbers = #tpu.dot_dimension_numbers<[1], [0], [0], [1], [0, 0, 1, 1], [], []>} : vector<8x4xf32>, vector<4x1024xf32>, vector<8x1024xf32> -> vector<8x1024xf32>
    %27 = arith.addf %22, %26 : vector<8x1024xf32>
    %c5 = arith.constant 5 : index
    %c0_18 = arith.constant 0 : index
    %c0_19 = arith.constant 0 : index
    %28 = vector.load %arg2[%c5, %c0_18, %c0_19] : memref<16x8x4xf32, #tpu.memory_space<vmem>>, vector<1x8x4xf32>
    %29 = vector.shape_cast %28 : vector<1x8x4xf32> to vector<8x4xf32>
    %30 = vector.extract_strided_slice %1 {offsets = [0, 33], sizes = [4, 1024], strides = [1, 1]} : vector<4x1152xf32> to vector<4x1024xf32>
    %cst_20 = arith.constant dense<0.000000e+00> : vector<8x1024xf32>
    %31 = tpu.matmul %29, %30, %cst_20 {dimension_numbers = #tpu.dot_dimension_numbers<[1], [0], [0], [1], [0, 0, 1, 1], [], []>} : vector<8x4xf32>, vector<4x1024xf32>, vector<8x1024xf32> -> vector<8x1024xf32>
    %32 = arith.addf %27, %31 : vector<8x1024xf32>
    %c6 = arith.constant 6 : index
    %c0_21 = arith.constant 0 : index
    %c0_22 = arith.constant 0 : index
    %33 = vector.load %arg2[%c6, %c0_21, %c0_22] : memref<16x8x4xf32, #tpu.memory_space<vmem>>, vector<1x8x4xf32>
    %34 = vector.shape_cast %33 : vector<1x8x4xf32> to vector<8x4xf32>
    %35 = vector.extract_strided_slice %1 {offsets = [0, 34], sizes = [4, 1024], strides = [1, 1]} : vector<4x1152xf32> to vector<4x1024xf32>
    %cst_23 = arith.constant dense<0.000000e+00> : vector<8x1024xf32>
    %36 = tpu.matmul %34, %35, %cst_23 {dimension_numbers = #tpu.dot_dimension_numbers<[1], [0], [0], [1], [0, 0, 1, 1], [], []>} : vector<8x4xf32>, vector<4x1024xf32>, vector<8x1024xf32> -> vector<8x1024xf32>
    %37 = arith.addf %32, %36 : vector<8x1024xf32>
    %c7 = arith.constant 7 : index
    %c0_24 = arith.constant 0 : index
    %c0_25 = arith.constant 0 : index
    %38 = vector.load %arg2[%c7, %c0_24, %c0_25] : memref<16x8x4xf32, #tpu.memory_space<vmem>>, vector<1x8x4xf32>
    %39 = vector.shape_cast %38 : vector<1x8x4xf32> to vector<8x4xf32>
    %40 = vector.extract_strided_slice %1 {offsets = [0, 35], sizes = [4, 1024], strides = [1, 1]} : vector<4x1152xf32> to vector<4x1024xf32>
    %cst_26 = arith.constant dense<0.000000e+00> : vector<8x1024xf32>
    %41 = tpu.matmul %39, %40, %cst_26 {dimension_numbers = #tpu.dot_dimension_numbers<[1], [0], [0], [1], [0, 0, 1, 1], [], []>} : vector<8x4xf32>, vector<4x1024xf32>, vector<8x1024xf32> -> vector<8x1024xf32>
    %42 = arith.addf %37, %41 : vector<8x1024xf32>
    %c8 = arith.constant 8 : index
    %c0_27 = arith.constant 0 : index
    %c0_28 = arith.constant 0 : index
    %43 = vector.load %arg2[%c8, %c0_27, %c0_28] : memref<16x8x4xf32, #tpu.memory_space<vmem>>, vector<1x8x4xf32>
    %44 = vector.shape_cast %43 : vector<1x8x4xf32> to vector<8x4xf32>
    %45 = vector.extract_strided_slice %1 {offsets = [0, 64], sizes = [4, 1024], strides = [1, 1]} : vector<4x1152xf32> to vector<4x1024xf32>
    %cst_29 = arith.constant dense<0.000000e+00> : vector<8x1024xf32>
    %46 = tpu.matmul %44, %45, %cst_29 {dimension_numbers = #tpu.dot_dimension_numbers<[1], [0], [0], [1], [0, 0, 1, 1], [], []>} : vector<8x4xf32>, vector<4x1024xf32>, vector<8x1024xf32> -> vector<8x1024xf32>
    %47 = arith.addf %42, %46 : vector<8x1024xf32>
    %c9 = arith.constant 9 : index
    %c0_30 = arith.constant 0 : index
    %c0_31 = arith.constant 0 : index
    %48 = vector.load %arg2[%c9, %c0_30, %c0_31] : memref<16x8x4xf32, #tpu.memory_space<vmem>>, vector<1x8x4xf32>
    %49 = vector.shape_cast %48 : vector<1x8x4xf32> to vector<8x4xf32>
    %50 = vector.extract_strided_slice %1 {offsets = [0, 65], sizes = [4, 1024], strides = [1, 1]} : vector<4x1152xf32> to vector<4x1024xf32>
    %cst_32 = arith.constant dense<0.000000e+00> : vector<8x1024xf32>
    %51 = tpu.matmul %49, %50, %cst_32 {dimension_numbers = #tpu.dot_dimension_numbers<[1], [0], [0], [1], [0, 0, 1, 1], [], []>} : vector<8x4xf32>, vector<4x1024xf32>, vector<8x1024xf32> -> vector<8x1024xf32>
    %52 = arith.addf %47, %51 : vector<8x1024xf32>
    %c10 = arith.constant 10 : index
    %c0_33 = arith.constant 0 : index
    %c0_34 = arith.constant 0 : index
    %53 = vector.load %arg2[%c10, %c0_33, %c0_34] : memref<16x8x4xf32, #tpu.memory_space<vmem>>, vector<1x8x4xf32>
    %54 = vector.shape_cast %53 : vector<1x8x4xf32> to vector<8x4xf32>
    %55 = vector.extract_strided_slice %1 {offsets = [0, 66], sizes = [4, 1024], strides = [1, 1]} : vector<4x1152xf32> to vector<4x1024xf32>
    %cst_35 = arith.constant dense<0.000000e+00> : vector<8x1024xf32>
    %56 = tpu.matmul %54, %55, %cst_35 {dimension_numbers = #tpu.dot_dimension_numbers<[1], [0], [0], [1], [0, 0, 1, 1], [], []>} : vector<8x4xf32>, vector<4x1024xf32>, vector<8x1024xf32> -> vector<8x1024xf32>
    %57 = arith.addf %52, %56 : vector<8x1024xf32>
    %c11 = arith.constant 11 : index
    %c0_36 = arith.constant 0 : index
    %c0_37 = arith.constant 0 : index
    %58 = vector.load %arg2[%c11, %c0_36, %c0_37] : memref<16x8x4xf32, #tpu.memory_space<vmem>>, vector<1x8x4xf32>
    %59 = vector.shape_cast %58 : vector<1x8x4xf32> to vector<8x4xf32>
    %60 = vector.extract_strided_slice %1 {offsets = [0, 67], sizes = [4, 1024], strides = [1, 1]} : vector<4x1152xf32> to vector<4x1024xf32>
    %cst_38 = arith.constant dense<0.000000e+00> : vector<8x1024xf32>
    %61 = tpu.matmul %59, %60, %cst_38 {dimension_numbers = #tpu.dot_dimension_numbers<[1], [0], [0], [1], [0, 0, 1, 1], [], []>} : vector<8x4xf32>, vector<4x1024xf32>, vector<8x1024xf32> -> vector<8x1024xf32>
    %62 = arith.addf %57, %61 : vector<8x1024xf32>
    %c12 = arith.constant 12 : index
    %c0_39 = arith.constant 0 : index
    %c0_40 = arith.constant 0 : index
    %63 = vector.load %arg2[%c12, %c0_39, %c0_40] : memref<16x8x4xf32, #tpu.memory_space<vmem>>, vector<1x8x4xf32>
    %64 = vector.shape_cast %63 : vector<1x8x4xf32> to vector<8x4xf32>
    %65 = vector.extract_strided_slice %1 {offsets = [0, 96], sizes = [4, 1024], strides = [1, 1]} : vector<4x1152xf32> to vector<4x1024xf32>
    %cst_41 = arith.constant dense<0.000000e+00> : vector<8x1024xf32>
    %66 = tpu.matmul %64, %65, %cst_41 {dimension_numbers = #tpu.dot_dimension_numbers<[1], [0], [0], [1], [0, 0, 1, 1], [], []>} : vector<8x4xf32>, vector<4x1024xf32>, vector<8x1024xf32> -> vector<8x1024xf32>
    %67 = arith.addf %62, %66 : vector<8x1024xf32>
    %c13 = arith.constant 13 : index
    %c0_42 = arith.constant 0 : index
    %c0_43 = arith.constant 0 : index
    %68 = vector.load %arg2[%c13, %c0_42, %c0_43] : memref<16x8x4xf32, #tpu.memory_space<vmem>>, vector<1x8x4xf32>
    %69 = vector.shape_cast %68 : vector<1x8x4xf32> to vector<8x4xf32>
    %70 = vector.extract_strided_slice %1 {offsets = [0, 97], sizes = [4, 1024], strides = [1, 1]} : vector<4x1152xf32> to vector<4x1024xf32>
    %cst_44 = arith.constant dense<0.000000e+00> : vector<8x1024xf32>
    %71 = tpu.matmul %69, %70, %cst_44 {dimension_numbers = #tpu.dot_dimension_numbers<[1], [0], [0], [1], [0, 0, 1, 1], [], []>} : vector<8x4xf32>, vector<4x1024xf32>, vector<8x1024xf32> -> vector<8x1024xf32>
    %72 = arith.addf %67, %71 : vector<8x1024xf32>
    %c14 = arith.constant 14 : index
    %c0_45 = arith.constant 0 : index
    %c0_46 = arith.constant 0 : index
    %73 = vector.load %arg2[%c14, %c0_45, %c0_46] : memref<16x8x4xf32, #tpu.memory_space<vmem>>, vector<1x8x4xf32>
    %74 = vector.shape_cast %73 : vector<1x8x4xf32> to vector<8x4xf32>
    %75 = vector.extract_strided_slice %1 {offsets = [0, 98], sizes = [4, 1024], strides = [1, 1]} : vector<4x1152xf32> to vector<4x1024xf32>
    %cst_47 = arith.constant dense<0.000000e+00> : vector<8x1024xf32>
    %76 = tpu.matmul %74, %75, %cst_47 {dimension_numbers = #tpu.dot_dimension_numbers<[1], [0], [0], [1], [0, 0, 1, 1], [], []>} : vector<8x4xf32>, vector<4x1024xf32>, vector<8x1024xf32> -> vector<8x1024xf32>
    %77 = arith.addf %72, %76 : vector<8x1024xf32>
    %c15 = arith.constant 15 : index
    %c0_48 = arith.constant 0 : index
    %c0_49 = arith.constant 0 : index
    %78 = vector.load %arg2[%c15, %c0_48, %c0_49] : memref<16x8x4xf32, #tpu.memory_space<vmem>>, vector<1x8x4xf32>
    %79 = vector.shape_cast %78 : vector<1x8x4xf32> to vector<8x4xf32>
    %80 = vector.extract_strided_slice %1 {offsets = [0, 99], sizes = [4, 1024], strides = [1, 1]} : vector<4x1152xf32> to vector<4x1024xf32>
    %cst_50 = arith.constant dense<0.000000e+00> : vector<8x1024xf32>
    %81 = tpu.matmul %79, %80, %cst_50 {dimension_numbers = #tpu.dot_dimension_numbers<[1], [0], [0], [1], [0, 0, 1, 1], [], []>} : vector<8x4xf32>, vector<4x1024xf32>, vector<8x1024xf32> -> vector<8x1024xf32>
    %82 = arith.addf %77, %81 : vector<8x1024xf32>
    %c0_51 = arith.constant 0 : index
    %c0_52 = arith.constant 0 : index
    %83 = vector.load %arg3[%c0_51, %c0_52] : memref<1x1024xf32, #tpu.memory_space<vmem>>, vector<1x1024xf32>
    %84 = vector.broadcast %83 : vector<1x1024xf32> to vector<8x1024xf32>
    %85 = arith.mulf %82, %84 : vector<8x1024xf32>
    %c0_53 = arith.constant 0 : index
    %c0_54 = arith.constant 0 : index
    %c0_55 = arith.constant 0 : index
    %86 = vector.load %arg4[%c0_53, %c0_54, %c0_55] : memref<1x8x1024xf32, #tpu.memory_space<vmem>>, vector<1x8x1024xf32>
    %87 = vector.shape_cast %86 : vector<1x8x1024xf32> to vector<8x1024xf32>
    %88 = vector.shape_cast %85 : vector<8x1024xf32> to vector<1x8x1024xf32>
    tpu.vector_store %arg4[%c0_53, %c0_54, %c0_55], %88 {strides = array<i32>} : memref<1x8x1024xf32, #tpu.memory_space<vmem>>, vector<1x8x1024xf32>,
    %cst_56 = arith.constant dense<0.000000e+00> : vector<8xf32>
    %89 = vector.multi_reduction <add>, %85, %cst_56 [1] : vector<8x1024xf32> to vector<8xf32>
    %90 = vector.shape_cast %89 : vector<8xf32> to vector<8x1xf32>
    %c0_57 = arith.constant 0 : index
    %c0_58 = arith.constant 0 : index
    %c0_59 = arith.constant 0 : index
    %91 = vector.load %arg5[%c0_57, %c0_58, %c0_59] : memref<1x8x1xf32, #tpu.memory_space<vmem>>, vector<1x8x1xf32>
    %92 = vector.shape_cast %91 : vector<1x8x1xf32> to vector<8x1xf32>
    %93 = vector.shape_cast %90 : vector<8x1xf32> to vector<1x8x1xf32>
    tpu.vector_store %arg5[%c0_57, %c0_58, %c0_59], %93 {strides = array<i32>} : memref<1x8x1xf32, #tpu.memory_space<vmem>>, vector<1x8x1xf32>,
    %94 = arith.mulf %85, %85 : vector<8x1024xf32>
    %cst_60 = arith.constant dense<0.000000e+00> : vector<8xf32>
    %95 = vector.multi_reduction <add>, %94, %cst_60 [1] : vector<8x1024xf32> to vector<8xf32>
    %96 = vector.shape_cast %95 : vector<8xf32> to vector<8x1xf32>
    %c0_61 = arith.constant 0 : index
    %c0_62 = arith.constant 0 : index
    %c0_63 = arith.constant 0 : index
    %97 = vector.load %arg6[%c0_61, %c0_62, %c0_63] : memref<1x8x1xf32, #tpu.memory_space<vmem>>, vector<1x8x1xf32>
    %98 = vector.shape_cast %97 : vector<1x8x1xf32> to vector<8x1xf32>
    %99 = vector.shape_cast %96 : vector<8x1xf32> to vector<1x8x1xf32>
    tpu.vector_store %arg6[%c0_61, %c0_62, %c0_63], %99 {strides = array<i32>} : memref<1x8x1xf32, #tpu.memory_space<vmem>>, vector<1x8x1xf32>,
    return
  }
  func.func @transform_0(%arg0: i32) -> (i32, i32, i32) {
    %c0_i32 = arith.constant 0 : i32
    %c0_i32_0 = arith.constant 0 : i32
    %c0_i32_1 = arith.constant 0 : i32
    return %arg0, %c0_i32, %c0_i32_0 : i32, i32, i32
  }
  func.func @transform_1(%arg0: i32) -> (i32, i32, i32) {
    %c0_i32 = arith.constant 0 : i32
    %c0_i32_0 = arith.constant 0 : i32
    %c0_i32_1 = arith.constant 0 : i32
    %c0_i32_2 = arith.constant 0 : i32
    return %c0_i32, %c0_i32_0, %c0_i32_1 : i32, i32, i32
  }
  func.func @transform_2(%arg0: i32) -> (i32, i32) {
    %c0_i32 = arith.constant 0 : i32
    %c0_i32_0 = arith.constant 0 : i32
    %c0_i32_1 = arith.constant 0 : i32
    return %c0_i32, %c0_i32_0 : i32, i32
  }
  func.func @transform_3(%arg0: i32) -> (i32, i32, i32) {
    %c0_i32 = arith.constant 0 : i32
    %c0_i32_0 = arith.constant 0 : i32
    %c0_i32_1 = arith.constant 0 : i32
    return %arg0, %c0_i32, %c0_i32_0 : i32, i32, i32
  }
  func.func @transform_4(%arg0: i32) -> (i32, i32, i32) {
    %c0_i32 = arith.constant 0 : i32
    %c0_i32_0 = arith.constant 0 : i32
    %c0_i32_1 = arith.constant 0 : i32
    return %arg0, %c0_i32, %c0_i32_0 : i32, i32, i32
  }
  func.func @transform_5(%arg0: i32) -> (i32, i32, i32) {
    %c0_i32 = arith.constant 0 : i32
    %c0_i32_0 = arith.constant 0 : i32
    %c0_i32_1 = arith.constant 0 : i32
    return %arg0, %c0_i32, %c0_i32_0 : i32, i32, i32
  }
}

</mosaic_0001>

<bundles_post_ra>
// kernel: tpu_custom_call.1
= control target key start
LH: loop header
LB: loop body
LE: loop exit
PB: predicated region body
PF: predicated region fallthrough
CT: control target
= control target key end

     0   :  { %11 = vsyncpa [#allocation3], 0  ;;  %s7276_s0 = inlined_call_operand.vmem [shape: f32[2,4,1152], index: 0, kind: input, shape index: {}]   ;;  %s7277_s1 = inlined_call_operand.vmem [shape: f32[16,8,4], index: 1, kind: input, shape index: {}]   ;;  %s7278_s2 = inlined_call_operand.vmem [shape: f32[1,1024], index: 2, kind: input, shape index: {}]   ;;  %s7279_s3 = inlined_call_operand.hbm [shape: f32[2,8,1024], index: 3, kind: output, shape index: {0}]   ;;  %s7280_s4 = inlined_call_operand.vmem [shape: f32[2,8,1], index: 4, kind: output, shape index: {1}]   ;;  %s7281_s5 = inlined_call_operand.vmem [shape: f32[2,8,1], index: 5, kind: output, shape index: {2}]  }
   0x1   :  { %13 = vsyncpa [#allocation3 + $0x1], 0  ;;  %s6269_s18 = smov 0   ;;  %s6271_s19 = smov 0  }
   0x2   :  { %s6273_s20 = smov 0   ;;  %s6275_s21 = smov 0  }
   0x3 LB: > { %s6290_s22 = sadd.s32 4294967295, %s6220_s21   ;;  %s5879_s23 = sadd.s32 4294967294, %s6220_s21   ;;  %s6220_s21 = sphi %s6275_s21, %s7313_s21   ;;  %s6216_s20 = sphi %s6273_s20, %s7312_s20   ;;  %s6212_s19 = sphi %s6271_s19, %s7311_s19   ;;  %s6208_s18 = sphi %s6269_s18, %s7310_s18  }
   0x4   : > { %s6294_s24 = sadd.s32 1, %s6220_s21   ;;  %s94_s25 = sadd.s32 1, %s6216_s20 }
   0x5   : > { %s91_s26 = ssub.s32 %s6220_s21, %s6294_s24  ;;  %p104_p0 = scmp.ne.s32.totalorder %s6216_s20, %s6212_s19 }
   0x6   : > { %p92_p1 = scmp.eq.s32.totalorder %s91_s26, 0  ;;  %p105_p2 = scmp.eq.s32.totalorder %s6290_s22, 1 }
   0x7   : > { %p110_p3 = scmp.ne.s32.totalorder %s6212_s19, %s6208_s18  ;;  %p111_p4 = scmp.eq.s32.totalorder %s5879_s23, 1 }
   0x8   : > { %s6305_s27 = scalar_select %p92_p1, %s6216_s20, %s94_s25  }
   0x9   : > { %p6307_p5 = por %p105_p2, %p104_p0  ;;  %p6311_p6 = por %p111_p4, %p110_p3 }
   0xa   : > { %p5882_p7 = scmp.ge.s32.totalorder %s6220_s21, 1  ;;  %p195_p8 = scmp.lt.s32.totalorder %s6220_s21, 3 }
   0xc   : > { %p196_p9 = pnand %p5882_p7, %p195_p8 }
   0xe   : > { %199 = sbr.rel (%p196_p9) target bundleno = 758 (0x2f6), region = 32 }
  0x13   : > { %p231_p10 = scmp.lt.s32.totalorder %s6290_s22, 1  ;;  %v6222_v0 = vmov 0.0   ;;  %s6223_s10 = smov 127   ;;  %vm279_vm0 = vcmask 1039360   ;;  %vm292_vm1 = vcmask 1043456   ;;  %v5887_v16 = vld [vmem:[%s7277_s1 + $0x8] sm:$0xff] }
  0x14   : > { %373 = vmatprep.mubr.f32.mxu0 %v6222_v0  ;;  %444 = vmatprep.mubr.f32.mxu1 %v6222_v0  ;;  %s6224_s11 = smov 126   ;;  %s6225_s12 = smov 125   ;;  %vm288_vm2 = vcmask 31744   ;;  %v249_v28 = vld [vmem:[%s7277_s1] sm:$0xff]  ;;  %vm916_vm3 = vcmask 1031168   ;;  %v5912_v41 = vld [vmem:[%s7277_s1 + $0x10] sm:$0xff] }
  0x15   : > { %s6319_s30 = scalar_select %p231_p10, %s6290_s22, 1  ;;  %vm1256_vm4 = vcmask 1022976   ;;  %v5925_v52 = vld [vmem:[%s7277_s1 + $0x18] sm:$0xff]  ;;  %vm1596_vm5 = vcmask 785408   ;;  %vm1936_vm6 = vcmask 777216   ;;  %vm2276_vm7 = vcmask 769024  }
  0x16   : > { %s6226_s13 = smov 96   ;;  %s6227_s14 = smov 95   ;;  %vm2616_vm8 = vcmask 760832   ;;  %vm2956_vm9 = vcmask 523264   ;;  %vm3296_vm10 = vcmask 515072   ;;  %vm3636_vm11 = vcmask 506880  }
  0x17   : > { %s6100_s6 = smul.u32 36, %s6319_s30  ;;  %s6228_s15 = smov 94   ;;  %vm3976_vm12 = vcmask 498688   ;;  %vm4316_vm13 = vcmask 261120   ;;  %vm4656_vm14 = vcmask 252928   ;;  %vm4996_vm15 = vcmask 244736  }
  0x18   : > { %s6229_s16 = smov 93   ;;  %s6230_s25 = smov 64  }
  0x19   : > { %s235_s9 = scalar_lea.vmem %s7276_s0, %s6100_s6  ;;  %s6234_s23 = smov 32  }
  0x1a   : > { %v6327_v1 = vld [vmem:[%s235_s9 + $0x8] sm:$0xff]  ;;  %v6329_v2 = vld [vmem:[%s235_s9] sm:$0xff]  ;;  %v6337_v4 = vld [vmem:[%s235_s9 + $0x10] sm:$0xff]  ;;  %s6235_s6 = smov 31   ;;  %s6099_s17 = sshll.u32 %s6290_s22, 10 }
  0x1b   : > { %265 = vrot.lane.b32.xlu0 %v6327_v1, %s6223_s10  ;;  %261 = vrot.lane.b32.xlu1 %v6329_v2, %s6223_s10  ;;  %v6335_v3 = vcombine.high %v6327_v1, %v6327_v1  ;;  %v6343_v5 = vcombine.high %v6337_v4, %v6337_v4  ;;  %v6347_v6 = vcombine.high %v6329_v2, %v6329_v2  ;;  %v6349_v7 = vld [vmem:[%s235_s9 + $0x18] sm:$0xff]  ;;  %v6359_v9 = vld [vmem:[%s235_s9 + $0x20] sm:$0xf]  ;;  %s6231_s9 = smov 63   ;;  %s5764_s26 = scalar_lea.hbm %s7279_s3, %s6099_s17 }
  0x1c   : > { %v6355_v8 = vcombine.high %v6349_v7, %v6349_v7 }
  0x1f   : > { %269 = vrot.lane.b32.xlu0 %v6337_v4, %s6223_s10  ;;  %267 = vrot.lane.b32.xlu1 %v6335_v3, %s6223_s10 }
  0x23   : > { %271 = vrot.lane.b32.xlu1 %v6343_v5, %s6223_s10  ;;  %263 = vrot.lane.b32.xlu0 %v6347_v6, %s6223_s10 }
  0x27   : > { %275 = vrot.lane.b32.xlu1 %v6355_v8, %s6223_s10  ;;  %273 = vrot.lane.b32.xlu0 %v6349_v7, %s6223_s10 }
  0x2b   : > { %900 = vrot.lane.b32.xlu1 %v6347_v6, %s6224_s11  ;;  %277 = vrot.lane.b32.xlu0 %v6359_v9, %s6223_s10 }
  0x2f   : > { %898 = vrot.lane.b32.xlu1 %v6329_v2, %s6224_s11  ;;  %902 = vrot.lane.b32.xlu0 %v6327_v1, %s6224_s11 }
  0x33   : > { %906 = vrot.lane.b32.xlu1 %v6337_v4, %s6224_s11  ;;  %904 = vrot.lane.b32.xlu0 %v6335_v3, %s6224_s11 }
  0x37   : > { %910 = vrot.lane.b32.xlu1 %v6349_v7, %s6224_s11  ;;  %908 = vrot.lane.b32.xlu0 %v6343_v5, %s6224_s11 }
  0x3b   : > { %914 = vrot.lane.b32.xlu1 %v6359_v9, %s6224_s11  ;;  %912 = vrot.lane.b32.xlu0 %v6355_v8, %s6224_s11 }
  0x3f   : > { %1242 = vrot.lane.b32.xlu1 %v6327_v1, %s6225_s12  ;;  %1240 = vrot.lane.b32.xlu0 %v6347_v6, %s6225_s12 }
  0x43   : > { %1244 = vrot.lane.b32.xlu1 %v6335_v3, %s6225_s12  ;;  %1238 = vrot.lane.b32.xlu0 %v6329_v2, %s6225_s12 }
  0x47   : > { %1248 = vrot.lane.b32.xlu1 %v6343_v5, %s6225_s12  ;;  %1246 = vrot.lane.b32.xlu0 %v6337_v4, %s6225_s12 }
  0x4b   : > { %1252 = vrot.lane.b32.xlu1 %v6355_v8, %s6225_s12  ;;  %1250 = vrot.lane.b32.xlu0 %v6349_v7, %s6225_s12 }
  0x4f   : > { %1580 = vrot.lane.b32.xlu1 %v6347_v6, %s6226_s13  ;;  %1254 = vrot.lane.b32.xlu0 %v6359_v9, %s6225_s12  ;;  %s6232_s12 = smov 62  }
  0x53   : > { %1578 = vrot.lane.b32.xlu1 %v6329_v2, %s6226_s13  ;;  %1582 = vrot.lane.b32.xlu0 %v6327_v1, %s6226_s13 }
  0x57   : > { %1586 = vrot.lane.b32.xlu1 %v6337_v4, %s6226_s13  ;;  %1584 = vrot.lane.b32.xlu0 %v6335_v3, %s6226_s13 }
  0x5b   : > { %1590 = vrot.lane.b32.xlu1 %v6349_v7, %s6226_s13  ;;  %1588 = vrot.lane.b32.xlu0 %v6343_v5, %s6226_s13 }
  0x5f   : > { %1594 = vrot.lane.b32.xlu1 %v6359_v9, %s6226_s13  ;;  %1592 = vrot.lane.b32.xlu0 %v6355_v8, %s6226_s13 }
  0x63   : > { %1922 = vrot.lane.b32.xlu1 %v6327_v1, %s6227_s14  ;;  %1920 = vrot.lane.b32.xlu0 %v6347_v6, %s6227_s14 }
  0x67   : > { %1924 = vrot.lane.b32.xlu1 %v6335_v3, %s6227_s14  ;;  %1918 = vrot.lane.b32.xlu0 %v6329_v2, %s6227_s14 }
  0x6b   : > { %1928 = vrot.lane.b32.xlu1 %v6343_v5, %s6227_s14  ;;  %1926 = vrot.lane.b32.xlu0 %v6337_v4, %s6227_s14 }
  0x6f   : > { %1932 = vrot.lane.b32.xlu1 %v6355_v8, %s6227_s14  ;;  %1930 = vrot.lane.b32.xlu0 %v6349_v7, %s6227_s14 }
  0x73   : > { %2260 = vrot.lane.b32.xlu1 %v6347_v6, %s6228_s15  ;;  %1934 = vrot.lane.b32.xlu0 %v6359_v9, %s6227_s14  ;;  %s216_s14 = sand.u32 1, %s6212_s19  }
  0x74   : > { %s5744_s7 = scalar_lea.sflag [#allocation3], %s216_s14 }
  0x77   : > { %2258 = vrot.lane.b32.xlu1 %v6329_v2, %s6228_s15  ;;  %2262 = vrot.lane.b32.xlu0 %v6327_v1, %s6228_s15 }
  0x7b   : > { %2266 = vrot.lane.b32.xlu1 %v6337_v4, %s6228_s15  ;;  %2264 = vrot.lane.b32.xlu0 %v6335_v3, %s6228_s15 }
  0x7f   : > { %2270 = vrot.lane.b32.xlu1 %v6349_v7, %s6228_s15  ;;  %2268 = vrot.lane.b32.xlu0 %v6343_v5, %s6228_s15 }
  0x83   : > { %2274 = vrot.lane.b32.xlu1 %v6359_v9, %s6228_s15  ;;  %2272 = vrot.lane.b32.xlu0 %v6355_v8, %s6228_s15  ;;  %s6233_s15 = smov 61  }
  0x87   : > { %2602 = vrot.lane.b32.xlu1 %v6327_v1, %s6229_s16  ;;  %2600 = vrot.lane.b32.xlu0 %v6347_v6, %s6229_s16 }
  0x8b   : > { %2604 = vrot.lane.b32.xlu1 %v6335_v3, %s6229_s16  ;;  %2598 = vrot.lane.b32.xlu0 %v6329_v2, %s6229_s16 }
  0x8d   : > { %v266_v10 = vpop.permute.xlu0 %265  ;;  %v262_v11 = vpop.permute.xlu1 %261 }
  0x8f   : > { %2608 = vrot.lane.b32.xlu1 %v6343_v5, %s6229_s16  ;;  %2606 = vrot.lane.b32.xlu0 %v6337_v4, %s6229_s16 }
  0x91   : > { %v270_v12 = vpop.permute.xlu0 %269  ;;  %v268_v13 = vpop.permute.xlu1 %267 }
  0x92   : > { %v283_v14 = vsel %vm279_vm0, %v268_v13, %v270_v12  ;;  %v282_v15 = vsel %vm279_vm0, %v266_v10, %v268_v13 }
  0x93   : > { %5891 = vmatprep.subr.msk.mxu1 %vm292_vm1, %v283_v14  ;;  %2612 = vrot.lane.b32.xlu1 %v6355_v8, %s6229_s16 }
  0x94   : > { %2610 = vrot.lane.b32.xlu0 %v6349_v7, %s6229_s16  ;;  %5892 = vmatpush1.msk.msra.mxu1 %vm292_vm1, %v282_v15 }
  0x95   : > { %v272_v17 = vpop.permute.xlu1 %271  ;;  %v264_v18 = vpop.permute.xlu0 %263  ;;  %5893 = vmatmul.mubr.msk.f32.vlgmr.msra.gmra.mxu1 %vm288_vm2, %v5887_v16 }
  0x96   : > { %v281_v19 = vsel %vm279_vm0, %v264_v18, %v266_v10  ;;  %v280_v20 = vsel %vm279_vm0, %v262_v11, %v264_v18  ;;  %586 = vmatprep.mubr.f32.mxu1 %v6222_v0  ;;  %v284_v24 = vsel %vm279_vm0, %v270_v12, %v272_v17 }
  0x97   : > { %2940 = vrot.lane.b32.xlu1 %v6347_v6, %s6230_s25  ;;  %5888 = vmatprep.subr.msk.mxu0 %vm292_vm1, %v281_v19 }
  0x98   : > { %2614 = vrot.lane.b32.xlu0 %v6359_v9, %s6229_s16  ;;  %5889 = vmatpush1.msk.msra.mxu0 %vm292_vm1, %v280_v20 }
  0x99   : > { %v276_v21 = vpop.permute.xlu1 %275  ;;  %5890 = vmatmul.mubr.msk.f32.vlgmr.msra.gmra.mxu0 %vm288_vm2, %v5887_v16  ;;  %v274_v22 = vpop.permute.xlu0 %273 }
  0x9a   : > { %v285_v23 = vsel %vm279_vm0, %v272_v17, %v274_v22  ;;  %515 = vmatprep.mubr.f32.mxu0 %v6222_v0  ;;  %v286_v29 = vsel %vm279_vm0, %v274_v22, %v276_v21 }
  0x9b   : > { %2938 = vrot.lane.b32.xlu1 %v6329_v2, %s6230_s25  ;;  %5894 = vmatprep.subr.msk.mxu0 %vm292_vm1, %v285_v23 }
  0x9c   : > { %2942 = vrot.lane.b32.xlu0 %v6327_v1, %s6230_s25  ;;  %5895 = vmatpush1.msk.msra.mxu0 %vm292_vm1, %v284_v24 }
  0x9d   : > { %v901_v25 = vpop.permute.xlu1 %900  ;;  %5896 = vmatmul.mubr.msk.f32.vlgmr.msra.gmra.mxu0 %vm288_vm2, %v5887_v16  ;;  %v278_v26 = vpop.permute.xlu0 %277  ;;  %5900 = vmatprep.subr.msk.mxu0 %vm292_vm1, %v6347_v6 }
  0x9e   : > { %v287_v27 = vsel %vm279_vm0, %v276_v21, %v278_v26  ;;  %5901 = vmatpush1.msk.msra.mxu0 %vm292_vm1, %v6329_v2  ;;  %676 = vmatprep.mubr.f32.mxu0 %v6222_v0  ;;  %vm5336_vm0 = vcmask 236544  }
  0x9f   : > { %2946 = vrot.lane.b32.xlu1 %v6337_v4, %s6230_s25  ;;  %5897 = vmatprep.subr.msk.mxu1 %vm292_vm1, %v287_v27 }
  0xa0   : > { %2944 = vrot.lane.b32.xlu0 %v6335_v3, %s6230_s25  ;;  %5898 = vmatpush1.msk.msra.mxu1 %vm292_vm1, %v286_v29 }
  0xa1   : > { %v899_v30 = vpop.permute.xlu1 %898  ;;  %5899 = vmatmul.mubr.msk.f32.vlgmr.msra.gmra.mxu1 %vm288_vm2, %v5887_v16  ;;  %5902 = vmatmul.mubr.msk.f32.vlgmr.msra.gmra.mxu0 %vm288_vm2, %v249_v28  ;;  %v903_v31 = vpop.permute.xlu0 %902  ;;  %v5938_v16 = vld [vmem:[%s7277_s1 + $0x20] sm:$0xff] }
  0xa2   : > { %5906 = vmatprep.subr.msk.mxu0 %vm292_vm1, %v6343_v5  ;;  %5903 = vmatprep.subr.msk.mxu1 %vm292_vm1, %v6335_v3  ;;  %v918_v32 = vsel %vm916_vm3, %v901_v25, %v903_v31  ;;  %v917_v35 = vsel %vm916_vm3, %v899_v30, %v901_v25 }
  0xa3   : > { %5907 = vmatpush1.msk.msra.mxu0 %vm292_vm1, %v6337_v4  ;;  %2950 = vrot.lane.b32.xlu1 %v6349_v7, %s6230_s25 }
  0xa4   : > { %2948 = vrot.lane.b32.xlu0 %v6343_v5, %s6230_s25  ;;  %5913 = vmatprep.subr.msk.mxu0 %vm292_vm1, %v918_v32 }
  0xa5   : > { %5904 = vmatpush1.msk.msra.mxu1 %vm292_vm1, %v6327_v1  ;;  %747 = vmatprep.mubr.f32.mxu1 %v6222_v0  ;;  %v907_v33 = vpop.permute.xlu1 %906  ;;  %v905_v34 = vpop.permute.xlu0 %904 }
  0xa6   : > { %818 = vmatprep.mubr.f32.mxu0 %v6222_v0  ;;  %5905 = vmatmul.mubr.msk.f32.vlgmr.msra.gmra.mxu1 %vm288_vm2, %v249_v28  ;;  %v920_v36 = vsel %vm916_vm3, %v905_v34, %v907_v33  ;;  %v919_v40 = vsel %vm916_vm3, %v903_v31, %v905_v34  ;;  %v5951_v34 = vld [vmem:[%s7277_s1 + $0x28] sm:$0xff] }
  0xa7   : > { %5908 = vmatmul.mubr.msk.f32.vlgmr.msra.gmra.mxu0 %vm288_vm2, %v249_v28  ;;  %5909 = vmatprep.subr.msk.mxu1 %vm292_vm1, %v6355_v8 }
  0xa8   : > { %5914 = vmatpush1.msk.msra.mxu0 %vm292_vm1, %v917_v35  ;;  %5910 = vmatpush1.msk.msra.mxu1 %vm292_vm1, %v6349_v7 }
  0xa9   : > { %2954 = vrot.lane.b32.xlu1 %v6359_v9, %s6230_s25  ;;  %2952 = vrot.lane.b32.xlu0 %v6355_v8, %s6230_s25  ;;  %v911_v37 = vpop.permute.xlu1 %910  ;;  %v909_v38 = vpop.permute.xlu0 %908 }
  0xaa   : > { %5916 = vmatprep.subr.msk.mxu1 %vm292_vm1, %v920_v36  ;;  %889 = vmatprep.mubr.f32.mxu1 %v6222_v0  ;;  %v922_v39 = vsel %vm916_vm3, %v909_v38, %v911_v37  ;;  %v921_v42 = vsel %vm916_vm3, %v907_v33, %v909_v38 }
  0xab   : > { %5911 = vmatmul.mubr.msk.f32.vlgmr.msra.gmra.mxu1 %vm288_vm2, %v249_v28  ;;  %1008 = vmatprep.mubr.f32.mxu0 %v6222_v0 }
  0xac   : > { %5917 = vmatpush1.msk.msra.mxu1 %vm292_vm1, %v919_v40  ;;  %5919 = vmatprep.subr.msk.mxu0 %vm292_vm1, %v922_v39 }
  0xad   : > { %3282 = vrot.lane.b32.xlu1 %v6327_v1, %s6231_s9  ;;  %3280 = vrot.lane.b32.xlu0 %v6347_v6, %s6231_s9  ;;  %v915_v43 = vpop.permute.xlu1 %914  ;;  %v913_v44 = vpop.permute.xlu0 %912 }
  0xae   : > { %5915 = vmatmul.mubr.msk.f32.vlgmr.msra.gmra.mxu0 %vm288_vm2, %v5912_v41  ;;  %1079 = vmatprep.mubr.f32.mxu1 %v6222_v0  ;;  %v924_v45 = vsel %vm916_vm3, %v913_v44, %v915_v43  ;;  %v923_v46 = vsel %vm916_vm3, %v911_v37, %v913_v44 }
  0xaf   : > { %5920 = vmatpush1.msk.msra.mxu0 %vm292_vm1, %v921_v42  ;;  %5922 = vmatprep.subr.msk.mxu1 %vm292_vm1, %v924_v45 }
  0xb0   : > { %5918 = vmatmul.mubr.msk.f32.vlgmr.msra.gmra.mxu1 %vm288_vm2, %v5912_v41  ;;  %1150 = vmatprep.mubr.f32.mxu0 %v6222_v0 }
  0xb1   : > { %3284 = vrot.lane.b32.xlu1 %v6335_v3, %s6231_s9  ;;  %3278 = vrot.lane.b32.xlu0 %v6329_v2, %s6231_s9  ;;  %v1243_v47 = vpop.permute.xlu1 %1242  ;;  %v1241_v48 = vpop.permute.xlu0 %1240 }
  0xb2   : > { %5923 = vmatpush1.msk.msra.mxu1 %vm292_vm1, %v923_v46  ;;  %v1258_v49 = vsel %vm1256_vm4, %v1241_v48, %v1243_v47  ;;  %5921 = vmatmul.mubr.msk.f32.vlgmr.msra.gmra.mxu0 %vm288_vm2, %v5912_v41 }
  0xb3   : > { %5926 = vmatprep.subr.msk.mxu0 %vm292_vm1, %v1258_v49  ;;  %1221 = vmatprep.mubr.f32.mxu1 %v6222_v0 }
  0xb4   : > { %5924 = vmatmul.mubr.msk.f32.vlgmr.msra.gmra.mxu1 %vm288_vm2, %v5912_v41  ;;  %1348 = vmatprep.mubr.f32.mxu0 %v6222_v0 }
  0xb5   : > { %3288 = vrot.lane.b32.xlu1 %v6343_v5, %s6231_s9  ;;  %3286 = vrot.lane.b32.xlu0 %v6337_v4, %s6231_s9  ;;  %v1245_v50 = vpop.permute.xlu1 %1244  ;;  %v1239_v51 = vpop.permute.xlu0 %1238 }
  0xb6   : > { %v1257_v53 = vsel %vm1256_vm4, %v1239_v51, %v1241_v48  ;;  %1419 = vmatprep.mubr.f32.mxu1 %v6222_v0  ;;  %v1259_v57 = vsel %vm1256_vm4, %v1243_v47, %v1245_v50 }
  0xb7   : > { %5927 = vmatpush1.msk.msra.mxu0 %vm292_vm1, %v1257_v53 }
  0xb8   : > { %5928 = vmatmul.mubr.msk.f32.vlgmr.msra.gmra.mxu0 %vm288_vm2, %v5925_v52 }
  0xb9   : > { %3292 = vrot.lane.b32.xlu1 %v6355_v8, %s6231_s9  ;;  %3290 = vrot.lane.b32.xlu0 %v6349_v7, %s6231_s9  ;;  %v1249_v54 = vpop.permute.xlu1 %1248  ;;  %v1247_v55 = vpop.permute.xlu0 %1246 }
  0xba   : > { %v1260_v56 = vsel %vm1256_vm4, %v1245_v50, %v1247_v55  ;;  %1490 = vmatprep.mubr.f32.mxu0 %v6222_v0  ;;  %v1261_v61 = vsel %vm1256_vm4, %v1247_v55, %v1249_v54 }
  0xbb   : > { %5929 = vmatprep.subr.msk.mxu1 %vm292_vm1, %v1260_v56 }
  0xbc   : > { %5930 = vmatpush1.msk.msra.mxu1 %vm292_vm1, %v1259_v57 }
  0xbd   : > { %3620 = vrot.lane.b32.xlu1 %v6347_v6, %s6232_s12  ;;  %3294 = vrot.lane.b32.xlu0 %v6359_v9, %s6231_s9  ;;  %v1253_v58 = vpop.permute.xlu1 %1252  ;;  %v1251_v59 = vpop.permute.xlu0 %1250  ;;  %s6236_s9 = smov 30  }
  0xbe   : > { %v1262_v60 = vsel %vm1256_vm4, %v1249_v54, %v1251_v59  ;;  %5931 = vmatmul.mubr.msk.f32.vlgmr.msra.gmra.mxu1 %vm288_vm2, %v5925_v52  ;;  %v1263_v11 = vsel %vm1256_vm4, %v1251_v59, %v1253_v58 }
  0xbf   : > { %5932 = vmatprep.subr.msk.mxu0 %vm292_vm1, %v1262_v60  ;;  %1561 = vmatprep.mubr.f32.mxu1 %v6222_v0 }
  0xc0   : > { %5933 = vmatpush1.msk.msra.mxu0 %vm292_vm1, %v1261_v61 }
  0xc1   : > { %3618 = vrot.lane.b32.xlu1 %v6329_v2, %s6232_s12  ;;  %3622 = vrot.lane.b32.xlu0 %v6327_v1, %s6232_s12  ;;  %v1581_v62 = vpop.permute.xlu1 %1580  ;;  %v1255_v63 = vpop.permute.xlu0 %1254 }
  0xc2   : > { %v1264_v10 = vsel %vm1256_vm4, %v1253_v58, %v1255_v63  ;;  %5934 = vmatmul.mubr.msk.f32.vlgmr.msra.gmra.mxu0 %vm288_vm2, %v5925_v52 }
  0xc3   : > { %5935 = vmatprep.subr.msk.mxu1 %vm292_vm1, %v1264_v10  ;;  %1688 = vmatprep.mubr.f32.mxu0 %v6222_v0 }
  0xc4   : > { %5936 = vmatpush1.msk.msra.mxu1 %vm292_vm1, %v1263_v11 }
  0xc5   : > { %3626 = vrot.lane.b32.xlu1 %v6337_v4, %s6232_s12  ;;  %3624 = vrot.lane.b32.xlu0 %v6335_v3, %s6232_s12  ;;  %v1579_v12 = vpop.permute.xlu1 %1578  ;;  %v1583_v13 = vpop.permute.xlu0 %1582 }
  0xc6   : > { %v1597_v14 = vsel %vm1596_vm5, %v1579_v12, %v1581_v62  ;;  %v1598_v15 = vsel %vm1596_vm5, %v1581_v62, %v1583_v13  ;;  %5937 = vmatmul.mubr.msk.f32.vlgmr.msra.gmra.mxu1 %vm288_vm2, %v5925_v52  ;;  %v5964_v52 = vld [vmem:[%s7277_s1 + $0x30] sm:$0xff] }
  0xc7   : > { %5939 = vmatprep.subr.msk.mxu0 %vm292_vm1, %v1598_v15  ;;  %1759 = vmatprep.mubr.f32.mxu1 %v6222_v0 }
  0xc8   : > { %5940 = vmatpush1.msk.msra.mxu0 %vm292_vm1, %v1597_v14 }
  0xc9   : > { %3630 = vrot.lane.b32.xlu1 %v6349_v7, %s6232_s12  ;;  %3628 = vrot.lane.b32.xlu0 %v6343_v5, %s6232_s12  ;;  %v1587_v17 = vpop.permute.xlu1 %1586  ;;  %v1585_v18 = vpop.permute.xlu0 %1584 }
  0xca   : > { %v1599_v19 = vsel %vm1596_vm5, %v1583_v13, %v1585_v18  ;;  %v1600_v20 = vsel %vm1596_vm5, %v1585_v18, %v1587_v17  ;;  %5941 = vmatmul.mubr.msk.f32.vlgmr.msra.gmra.mxu0 %vm288_vm2, %v5938_v16 }
  0xcb   : > { %5942 = vmatprep.subr.msk.mxu1 %vm292_vm1, %v1600_v20  ;;  %1830 = vmatprep.mubr.f32.mxu0 %v6222_v0 }
  0xcc   : > { %5943 = vmatpush1.msk.msra.mxu1 %vm292_vm1, %v1599_v19 }
  0xcd   : > { %3634 = vrot.lane.b32.xlu1 %v6359_v9, %s6232_s12  ;;  %3632 = vrot.lane.b32.xlu0 %v6355_v8, %s6232_s12  ;;  %v1591_v21 = vpop.permute.xlu1 %1590  ;;  %v1589_v22 = vpop.permute.xlu0 %1588  ;;  %s6237_s12 = smov 29  }
  0xce   : > { %v1601_v23 = vsel %vm1596_vm5, %v1587_v17, %v1589_v22  ;;  %v1602_v24 = vsel %vm1596_vm5, %v1589_v22, %v1591_v21  ;;  %5944 = vmatmul.mubr.msk.f32.vlgmr.msra.gmra.mxu1 %vm288_vm2, %v5938_v16 }
  0xcf   : > { %5945 = vmatprep.subr.msk.mxu0 %vm292_vm1, %v1602_v24  ;;  %1901 = vmatprep.mubr.f32.mxu1 %v6222_v0 }
  0xd0   : > { %5946 = vmatpush1.msk.msra.mxu0 %vm292_vm1, %v1601_v23 }
  0xd1   : > { %3962 = vrot.lane.b32.xlu1 %v6327_v1, %s6233_s15  ;;  %3960 = vrot.lane.b32.xlu0 %v6347_v6, %s6233_s15  ;;  %v1595_v25 = vpop.permute.xlu1 %1594  ;;  %v1593_v26 = vpop.permute.xlu0 %1592 }
  0xd2   : > { %v1603_v27 = vsel %vm1596_vm5, %v1591_v21, %v1593_v26  ;;  %v1604_v28 = vsel %vm1596_vm5, %v1593_v26, %v1595_v25  ;;  %5947 = vmatmul.mubr.msk.f32.vlgmr.msra.gmra.mxu0 %vm288_vm2, %v5938_v16 }
  0xd3   : > { %5948 = vmatprep.subr.msk.mxu1 %vm292_vm1, %v1604_v28  ;;  %2028 = vmatprep.mubr.f32.mxu0 %v6222_v0 }
  0xd4   : > { %5949 = vmatpush1.msk.msra.mxu1 %vm292_vm1, %v1603_v27 }
  0xd5   : > { %3964 = vrot.lane.b32.xlu1 %v6335_v3, %s6233_s15  ;;  %3958 = vrot.lane.b32.xlu0 %v6329_v2, %s6233_s15  ;;  %v1923_v29 = vpop.permute.xlu1 %1922  ;;  %v1921_v30 = vpop.permute.xlu0 %1920 }
  0xd6   : > { %v1938_v31 = vsel %vm1936_vm6, %v1921_v30, %v1923_v29  ;;  %5950 = vmatmul.mubr.msk.f32.vlgmr.msra.gmra.mxu1 %vm288_vm2, %v5938_v16  ;;  %v5977_v16 = vld [vmem:[%s7277_s1 + $0x38] sm:$0xff] }
  0xd7   : > { %5952 = vmatprep.subr.msk.mxu0 %vm292_vm1, %v1938_v31  ;;  %2099 = vmatprep.mubr.f32.mxu1 %v6222_v0 }
  0xd9   : > { %3968 = vrot.lane.b32.xlu1 %v6343_v5, %s6233_s15  ;;  %3966 = vrot.lane.b32.xlu0 %v6337_v4, %s6233_s15  ;;  %v1925_v32 = vpop.permute.xlu1 %1924  ;;  %v1919_v33 = vpop.permute.xlu0 %1918 }
  0xda   : > { %v1937_v35 = vsel %vm1936_vm6, %v1919_v33, %v1921_v30  ;;  %v1939_v39 = vsel %vm1936_vm6, %v1923_v29, %v1925_v32 }
  0xdb   : > { %5953 = vmatpush1.msk.msra.mxu0 %vm292_vm1, %v1937_v35 }
  0xdc   : > { %5954 = vmatmul.mubr.msk.f32.vlgmr.msra.gmra.mxu0 %vm288_vm2, %v5951_v34 }
  0xdd   : > { %3972 = vrot.lane.b32.xlu1 %v6355_v8, %s6233_s15  ;;  %3970 = vrot.lane.b32.xlu0 %v6349_v7, %s6233_s15  ;;  %v1929_v36 = vpop.permute.xlu1 %1928  ;;  %v1927_v37 = vpop.permute.xlu0 %1926 }
  0xde   : > { %v1940_v38 = vsel %vm1936_vm6, %v1925_v32, %v1927_v37  ;;  %2170 = vmatprep.mubr.f32.mxu0 %v6222_v0  ;;  %v1941_v43 = vsel %vm1936_vm6, %v1927_v37, %v1929_v36 }
  0xdf   : > { %5955 = vmatprep.subr.msk.mxu1 %vm292_vm1, %v1940_v38 }
  0xe0   : > { %5956 = vmatpush1.msk.msra.mxu1 %vm292_vm1, %v1939_v39 }
  0xe1   : > { %4300 = vrot.lane.b32.xlu1 %v6347_v6, %s6234_s23  ;;  %3974 = vrot.lane.b32.xlu0 %v6359_v9, %s6233_s15  ;;  %v1933_v40 = vpop.permute.xlu1 %1932  ;;  %v1931_v41 = vpop.permute.xlu0 %1930  ;;  %s5883_s15 = sshll.u32 %s216_s14, 6 }
  0xe2   : > { %v1942_v42 = vsel %vm1936_vm6, %v1929_v36, %v1931_v41  ;;  %5957 = vmatmul.mubr.msk.f32.vlgmr.msra.gmra.mxu1 %vm288_vm2, %v5951_v34  ;;  %v1943_v47 = vsel %vm1936_vm6, %v1931_v41, %v1933_v40  ;;  %s7208_s16 = scalar_lea.vmem [#allocation2], %s5883_s15 }
  0xe3   : > { %5958 = vmatprep.subr.msk.mxu0 %vm292_vm1, %v1942_v42  ;;  %2241 = vmatprep.mubr.f32.mxu1 %v6222_v0 }
  0xe4   : > { %5959 = vmatpush1.msk.msra.mxu0 %vm292_vm1, %v1941_v43 }
  0xe5   : > { %4298 = vrot.lane.b32.xlu1 %v6329_v2, %s6234_s23  ;;  %4302 = vrot.lane.b32.xlu0 %v6327_v1, %s6234_s23  ;;  %v2261_v44 = vpop.permute.xlu1 %2260  ;;  %v1935_v45 = vpop.permute.xlu0 %1934 }
  0xe6   : > { %v1944_v46 = vsel %vm1936_vm6, %v1933_v40, %v1935_v45  ;;  %5960 = vmatmul.mubr.msk.f32.vlgmr.msra.gmra.mxu0 %vm288_vm2, %v5951_v34 }
  0xe7   : > { %5961 = vmatprep.subr.msk.mxu1 %vm292_vm1, %v1944_v46  ;;  %2368 = vmatprep.mubr.f32.mxu0 %v6222_v0 }
  0xe8   : > { %5962 = vmatpush1.msk.msra.mxu1 %vm292_vm1, %v1943_v47 }
  0xe9   : > { %4306 = vrot.lane.b32.xlu1 %v6337_v4, %s6234_s23  ;;  %4304 = vrot.lane.b32.xlu0 %v6335_v3, %s6234_s23  ;;  %v2259_v48 = vpop.permute.xlu1 %2258  ;;  %v2263_v49 = vpop.permute.xlu0 %2262 }
  0xea   : > { %v2277_v50 = vsel %vm2276_vm7, %v2259_v48, %v2261_v44  ;;  %v2278_v51 = vsel %vm2276_vm7, %v2261_v44, %v2263_v49  ;;  %5963 = vmatmul.mubr.msk.f32.vlgmr.msra.gmra.mxu1 %vm288_vm2, %v5951_v34  ;;  %v5990_v34 = vld [vmem:[%s7277_s1 + $0x40] sm:$0xff] }
  0xeb   : > { %5965 = vmatprep.subr.msk.mxu0 %vm292_vm1, %v2278_v51  ;;  %2439 = vmatprep.mubr.f32.mxu1 %v6222_v0 }
  0xec   : > { %5966 = vmatpush1.msk.msra.mxu0 %vm292_vm1, %v2277_v50 }
  0xed   : > { %4310 = vrot.lane.b32.xlu1 %v6349_v7, %s6234_s23  ;;  %4308 = vrot.lane.b32.xlu0 %v6343_v5, %s6234_s23  ;;  %v2267_v53 = vpop.permute.xlu1 %2266  ;;  %v2265_v54 = vpop.permute.xlu0 %2264 }
  0xee   : > { %v2279_v55 = vsel %vm2276_vm7, %v2263_v49, %v2265_v54  ;;  %v2280_v56 = vsel %vm2276_vm7, %v2265_v54, %v2267_v53  ;;  %5967 = vmatmul.mubr.msk.f32.vlgmr.msra.gmra.mxu0 %vm288_vm2, %v5964_v52  ;;  %v6003_v49 = vld [vmem:[%s7277_s1 + $0x48] sm:$0xff] }
  0xef   : > { %5968 = vmatprep.subr.msk.mxu1 %vm292_vm1, %v2280_v56  ;;  %2510 = vmatprep.mubr.f32.mxu0 %v6222_v0 }
  0xf0   : > { %5969 = vmatpush1.msk.msra.mxu1 %vm292_vm1, %v2279_v55 }
  0xf1   : > { %4314 = vrot.lane.b32.xlu1 %v6359_v9, %s6234_s23  ;;  %4312 = vrot.lane.b32.xlu0 %v6355_v8, %s6234_s23  ;;  %v2271_v57 = vpop.permute.xlu1 %2270  ;;  %v2269_v58 = vpop.permute.xlu0 %2268 }
  0xf2   : > { %v2281_v59 = vsel %vm2276_vm7, %v2267_v53, %v2269_v58  ;;  %v2282_v60 = vsel %vm2276_vm7, %v2269_v58, %v2271_v57  ;;  %5970 = vmatmul.mubr.msk.f32.vlgmr.msra.gmra.mxu1 %vm288_vm2, %v5964_v52 }
  0xf3   : > { %5971 = vmatprep.subr.msk.mxu0 %vm292_vm1, %v2282_v60  ;;  %2581 = vmatprep.mubr.f32.mxu1 %v6222_v0 }
  0xf4   : > { %5972 = vmatpush1.msk.msra.mxu0 %vm292_vm1, %v2281_v59 }
  0xf5   : > { %4642 = vrot.lane.b32.xlu1 %v6327_v1, %s6235_s6  ;;  %4640 = vrot.lane.b32.xlu0 %v6347_v6, %s6235_s6  ;;  %v2275_v61 = vpop.permute.xlu1 %2274  ;;  %v2273_v62 = vpop.permute.xlu0 %2272 }
  0xf6   : > { %v2283_v63 = vsel %vm2276_vm7, %v2271_v57, %v2273_v62  ;;  %v2284_v10 = vsel %vm2276_vm7, %v2273_v62, %v2275_v61  ;;  %5973 = vmatmul.mubr.msk.f32.vlgmr.msra.gmra.mxu0 %vm288_vm2, %v5964_v52  ;;  %v6016_v61 = vld [vmem:[%s7277_s1 + $0x50] sm:$0xff] }
  0xf7   : > { %5974 = vmatprep.subr.msk.mxu1 %vm292_vm1, %v2284_v10  ;;  %2708 = vmatprep.mubr.f32.mxu0 %v6222_v0 }
  0xf8   : > { %5975 = vmatpush1.msk.msra.mxu1 %vm292_vm1, %v2283_v63 }
  0xf9   : > { %4644 = vrot.lane.b32.xlu1 %v6335_v3, %s6235_s6  ;;  %4638 = vrot.lane.b32.xlu0 %v6329_v2, %s6235_s6  ;;  %v2603_v11 = vpop.permute.xlu1 %2602  ;;  %v2601_v12 = vpop.permute.xlu0 %2600 }
  0xfa   : > { %v2618_v13 = vsel %vm2616_vm8, %v2601_v12, %v2603_v11  ;;  %5976 = vmatmul.mubr.msk.f32.vlgmr.msra.gmra.mxu1 %vm288_vm2, %v5964_v52 }
  0xfb   : > { %5978 = vmatprep.subr.msk.mxu0 %vm292_vm1, %v2618_v13  ;;  %2779 = vmatprep.mubr.f32.mxu1 %v6222_v0 }
  0xfd   : > { %4648 = vrot.lane.b32.xlu1 %v6343_v5, %s6235_s6  ;;  %4646 = vrot.lane.b32.xlu0 %v6337_v4, %s6235_s6  ;;  %v2605_v14 = vpop.permute.xlu1 %2604  ;;  %v2599_v15 = vpop.permute.xlu0 %2598 }
  0xfe   : > { %v2617_v17 = vsel %vm2616_vm8, %v2599_v15, %v2601_v12  ;;  %v2619_v21 = vsel %vm2616_vm8, %v2603_v11, %v2605_v14 }
  0xff   : > { %5979 = vmatpush1.msk.msra.mxu0 %vm292_vm1, %v2617_v17 }
 0x100   : > { %5980 = vmatmul.mubr.msk.f32.vlgmr.msra.gmra.mxu0 %vm288_vm2, %v5977_v16 }
 0x101   : > { %4652 = vrot.lane.b32.xlu1 %v6355_v8, %s6235_s6  ;;  %4650 = vrot.lane.b32.xlu0 %v6349_v7, %s6235_s6  ;;  %v2609_v18 = vpop.permute.xlu1 %2608  ;;  %v2607_v19 = vpop.permute.xlu0 %2606 }
 0x102   : > { %v2620_v20 = vsel %vm2616_vm8, %v2605_v14, %v2607_v19  ;;  %2850 = vmatprep.mubr.f32.mxu0 %v6222_v0  ;;  %v2621_v25 = vsel %vm2616_vm8, %v2607_v19, %v2609_v18 }
 0x103   : > { %5981 = vmatprep.subr.msk.mxu1 %vm292_vm1, %v2620_v20 }
 0x104   : > { %5982 = vmatpush1.msk.msra.mxu1 %vm292_vm1, %v2619_v21 }
 0x105   : > { %4980 = vrot.lane.b32.xlu1 %v6347_v6, %s6236_s9  ;;  %4654 = vrot.lane.b32.xlu0 %v6359_v9, %s6235_s6  ;;  %v2613_v22 = vpop.permute.xlu1 %2612  ;;  %s5766_s6 = sshll.u32 %s7208_s16, 4  ;;  %s5767_s6 = int_to_ptr.vmem [resolvable:$true] %s5766_s6 }
 0x106   : > { %v2611_v23 = vpop.permute.xlu0 %2610  ;;  %5983 = vmatmul.mubr.msk.f32.vlgmr.msra.gmra.mxu1 %vm288_vm2, %v5977_v16  ;;  %s6160_s8 = scalar_lea.vmem %s5767_s6, 1024 }
 0x107   : > { %v2622_v24 = vsel %vm2616_vm8, %v2609_v18, %v2611_v23  ;;  %2921 = vmatprep.mubr.f32.mxu1 %v6222_v0  ;;  %v2623_v29 = vsel %vm2616_vm8, %v2611_v23, %v2613_v22  ;;  %p6161_p11 = scmp.ne.s32.totalorder %s5767_s6, %s6160_s8 }
 0x108   : > { %5984 = vmatprep.subr.msk.mxu0 %vm292_vm1, %v2622_v24 }
 0x109   : > { %4978 = vrot.lane.b32.xlu1 %v6329_v2, %s6236_s9  ;;  %4982 = vrot.lane.b32.xlu0 %v6327_v1, %s6236_s9  ;;  %v2941_v26 = vpop.permute.xlu1 %2940  ;;  %p6162_p12 = pnand %p6161_p11, %p6307_p5 }
 0x10a   : > { %5985 = vmatpush1.msk.msra.mxu0 %vm292_vm1, %v2621_v25  ;;  %v2615_v27 = vpop.permute.xlu0 %2614  ;;  %v6029_v25 = vld [vmem:[%s7277_s1 + $0x58] sm:$0xff] }
 0x10b   : > { %v2624_v28 = vsel %vm2616_vm8, %v2613_v22, %v2615_v27  ;;  %5986 = vmatmul.mubr.msk.f32.vlgmr.msra.gmra.mxu0 %vm288_vm2, %v5977_v16  ;;  %p6163_p13 = pneg %p6162_p12 }
 0x10c   : > { %5987 = vmatprep.subr.msk.mxu1 %vm292_vm1, %v2624_v28  ;;  %3048 = vmatprep.mubr.f32.mxu0 %v6222_v0 }
 0x10d   : > { %4986 = vrot.lane.b32.xlu1 %v6337_v4, %s6236_s9  ;;  %4984 = vrot.lane.b32.xlu0 %v6335_v3, %s6236_s9  ;;  %v2939_v30 = vpop.permute.xlu1 %2938 }
 0x10e   : > { %5988 = vmatpush1.msk.msra.mxu1 %vm292_vm1, %v2623_v29  ;;  %v2943_v31 = vpop.permute.xlu0 %2942  ;;  %v2957_v32 = vsel %vm2956_vm9, %v2939_v30, %v2941_v26 }
 0x10f   : > { %v2958_v33 = vsel %vm2956_vm9, %v2941_v26, %v2943_v31  ;;  %5989 = vmatmul.mubr.msk.f32.vlgmr.msra.gmra.mxu1 %vm288_vm2, %v5977_v16 }
 0x110   : > { %5991 = vmatprep.subr.msk.mxu0 %vm292_vm1, %v2958_v33  ;;  %3119 = vmatprep.mubr.f32.mxu1 %v6222_v0 }
 0x111   : > { %4990 = vrot.lane.b32.xlu1 %v6349_v7, %s6236_s9  ;;  %4988 = vrot.lane.b32.xlu0 %v6343_v5, %s6236_s9  ;;  %v2947_v35 = vpop.permute.xlu1 %2946 }
 0x112   : > { %5992 = vmatpush1.msk.msra.mxu0 %vm292_vm1, %v2957_v32  ;;  %v2945_v36 = vpop.permute.xlu0 %2944 }
 0x113   : > { %v2959_v37 = vsel %vm2956_vm9, %v2943_v31, %v2945_v36  ;;  %v2960_v38 = vsel %vm2956_vm9, %v2945_v36, %v2947_v35  ;;  %5993 = vmatmul.mubr.msk.f32.vlgmr.msra.gmra.mxu0 %vm288_vm2, %v5990_v34 }
 0x114   : > { %5994 = vmatprep.subr.msk.mxu1 %vm292_vm1, %v2960_v38  ;;  %3190 = vmatprep.mubr.f32.mxu0 %v6222_v0 }
 0x115   : > { %4994 = vrot.lane.b32.xlu1 %v6359_v9, %s6236_s9  ;;  %4992 = vrot.lane.b32.xlu0 %v6355_v8, %s6236_s9  ;;  %v2951_v39 = vpop.permute.xlu1 %2950  ;;  %s6238_s9 = smov [#allocation2]  }
 0x116   : > { %5995 = vmatpush1.msk.msra.mxu1 %vm292_vm1, %v2959_v37  ;;  %v2949_v40 = vpop.permute.xlu0 %2948  ;;  %s6164_s10 = sshll.u32 %s6238_s9, 4  ;;  %s6165_s10 = int_to_ptr.vmem [resolvable:$false] %s6164_s10 }
 0x117   : > { %v2961_v41 = vsel %vm2956_vm9, %v2947_v35, %v2949_v40  ;;  %v2962_v42 = vsel %vm2956_vm9, %v2949_v40, %v2951_v39  ;;  %5996 = vmatmul.mubr.msk.f32.vlgmr.msra.gmra.mxu1 %vm288_vm2, %v5990_v34  ;;  %s6166_s11 = scalar_lea.vmem %s6165_s10, 2048  ;;  %p6167_p0 = scmp.lt.s32.totalorder %s5767_s6, %s6165_s10 }
 0x118   : > { %5997 = vmatprep.subr.msk.mxu0 %vm292_vm1, %v2962_v42  ;;  %3261 = vmatprep.mubr.f32.mxu1 %v6222_v0  ;;  %p6168_p1 = scmp.lt.s32.totalorder %s6166_s11, %s6160_s8 }
 0x119   : > { %5322 = vrot.lane.b32.xlu1 %v6327_v1, %s6237_s12  ;;  %5320 = vrot.lane.b32.xlu0 %v6347_v6, %s6237_s12 }
 0x11a   : > { %5998 = vmatpush1.msk.msra.mxu0 %vm292_vm1, %v2961_v41  ;;  %p6169_p2 = por %p6168_p1, %p6167_p0 }
 0x11b   : > { %v2955_v43 = vpop.permute.xlu1 %2954  ;;  %v2953_v44 = vpop.permute.xlu0 %2952  ;;  %5999 = vmatmul.mubr.msk.f32.vlgmr.msra.gmra.mxu0 %vm288_vm2, %v5990_v34 }
 0x11c   : > { %v2963_v45 = vsel %vm2956_vm9, %v2951_v39, %v2953_v44  ;;  %v2964_v46 = vsel %vm2956_vm9, %v2953_v44, %v2955_v43  ;;  %3388 = vmatprep.mubr.f32.mxu0 %v6222_v0  ;;  %v6042_v43 = vld [vmem:[%s7277_s1 + $0x60] sm:$0xff]  ;;  %p6170_p3 = pnand %p6169_p2, %p6163_p13 }
 0x11d   : > { %5324 = vrot.lane.b32.xlu1 %v6335_v3, %s6237_s12  ;;  %5318 = vrot.lane.b32.xlu0 %v6329_v2, %s6237_s12 }
 0x11e   : > { %6000 = vmatprep.subr.msk.mxu1 %vm292_vm1, %v2964_v46 }
 0x11f   : > { %6001 = vmatpush1.msk.msra.mxu1 %vm292_vm1, %v2963_v45  ;;  %v3283_v1 = vpop.permute.xlu1 %3282  ;;  %v3281_v6 = vpop.permute.xlu0 %3280 }
 0x120   : > { %v3298_v47 = vsel %vm3296_vm10, %v3281_v6, %v3283_v1  ;;  %6002 = vmatmul.mubr.msk.f32.vlgmr.msra.gmra.mxu1 %vm288_vm2, %v5990_v34 }
 0x121   : > { %5328 = vrot.lane.b32.xlu1 %v6343_v5, %s6237_s12  ;;  %5326 = vrot.lane.b32.xlu0 %v6337_v4, %s6237_s12 }
 0x122   : > { %6004 = vmatprep.subr.msk.mxu0 %vm292_vm1, %v3298_v47  ;;  %3459 = vmatprep.mubr.f32.mxu1 %v6222_v0 }
 0x123   : > { %v3285_v2 = vpop.permute.xlu1 %3284  ;;  %v3279_v3 = vpop.permute.xlu0 %3278 }
 0x124   : > { %v3297_v48 = vsel %vm3296_vm10, %v3279_v3, %v3281_v6  ;;  %v3299_v51 = vsel %vm3296_vm10, %v3283_v1, %v3285_v2 }
 0x125   : > { %5332 = vrot.lane.b32.xlu1 %v6355_v8, %s6237_s12  ;;  %5330 = vrot.lane.b32.xlu0 %v6349_v7, %s6237_s12 }
 0x126   : > { %6005 = vmatpush1.msk.msra.mxu0 %vm292_vm1, %v3297_v48 }
 0x127   : > { %v3289_v4 = vpop.permute.xlu1 %3288  ;;  %v3287_v5 = vpop.permute.xlu0 %3286  ;;  %6006 = vmatmul.mubr.msk.f32.vlgmr.msra.gmra.mxu0 %vm288_vm2, %v6003_v49 }
 0x128   : > { %v3300_v50 = vsel %vm3296_vm10, %v3285_v2, %v3287_v5  ;;  %3530 = vmatprep.mubr.f32.mxu0 %v6222_v0  ;;  %v3301_v53 = vsel %vm3296_vm10, %v3287_v5, %v3289_v4 }
 0x129   : > { %5334 = vrot.lane.b32.xlu0 %v6359_v9, %s6237_s12  ;;  %6007 = vmatprep.subr.msk.mxu1 %vm292_vm1, %v3300_v50 }
 0x12a   : > { %6008 = vmatpush1.msk.msra.mxu1 %vm292_vm1, %v3299_v51 }
 0x12b   : > { %v3293_v7 = vpop.permute.xlu1 %3292  ;;  %v3291_v8 = vpop.permute.xlu0 %3290  ;;  %6009 = vmatmul.mubr.msk.f32.vlgmr.msra.gmra.mxu1 %vm288_vm2, %v6003_v49 }
 0x12c   : > { %v3302_v52 = vsel %vm3296_vm10, %v3289_v4, %v3291_v8  ;;  %3601 = vmatprep.mubr.f32.mxu1 %v6222_v0  ;;  %v3303_v56 = vsel %vm3296_vm10, %v3291_v8, %v3293_v7 }
 0x12d   : > { %6010 = vmatprep.subr.msk.mxu0 %vm292_vm1, %v3302_v52 }
 0x12e   : > { %6011 = vmatpush1.msk.msra.mxu0 %vm292_vm1, %v3301_v53 }
 0x12f   : > { %v3621_v54 = vpop.permute.xlu1 %3620  ;;  %v3295_v9 = vpop.permute.xlu0 %3294  ;;  %6012 = vmatmul.mubr.msk.f32.vlgmr.msra.gmra.mxu0 %vm288_vm2, %v6003_v49 }
 0x130   : > { %v3304_v55 = vsel %vm3296_vm10, %v3293_v7, %v3295_v9  ;;  %3728 = vmatprep.mubr.f32.mxu0 %v6222_v0 }
 0x131   : > { %6013 = vmatprep.subr.msk.mxu1 %vm292_vm1, %v3304_v55 }
 0x132   : > { %6014 = vmatpush1.msk.msra.mxu1 %vm292_vm1, %v3303_v56 }
 0x133   : > { %v3619_v57 = vpop.permute.xlu1 %3618  ;;  %v3623_v58 = vpop.permute.xlu0 %3622  ;;  %6015 = vmatmul.mubr.msk.f32.vlgmr.msra.gmra.mxu1 %vm288_vm2, %v6003_v49 }
 0x134   : > { %v3637_v59 = vsel %vm3636_vm11, %v3619_v57, %v3621_v54  ;;  %v3638_v60 = vsel %vm3636_vm11, %v3621_v54, %v3623_v58  ;;  %3799 = vmatprep.mubr.f32.mxu1 %v6222_v0 }
 0x135   : > { %6017 = vmatprep.subr.msk.mxu0 %vm292_vm1, %v3638_v60 }
 0x136   : > { %6018 = vmatpush1.msk.msra.mxu0 %vm292_vm1, %v3637_v59 }
 0x137   : > { %v3627_v62 = vpop.permute.xlu1 %3626  ;;  %6019 = vmatmul.mubr.msk.f32.vlgmr.msra.gmra.mxu0 %vm288_vm2, %v6016_v61  ;;  %v3625_v63 = vpop.permute.xlu0 %3624 }
 0x138   : > { %v3639_v10 = vsel %vm3636_vm11, %v3623_v58, %v3625_v63  ;;  %v3640_v11 = vsel %vm3636_vm11, %v3625_v63, %v3627_v62  ;;  %3870 = vmatprep.mubr.f32.mxu0 %v6222_v0 }
 0x139   : > { %6020 = vmatprep.subr.msk.mxu1 %vm292_vm1, %v3640_v11 }
 0x13a   : > { %6021 = vmatpush1.msk.msra.mxu1 %vm292_vm1, %v3639_v10 }
 0x13b   : > { %v3631_v12 = vpop.permute.xlu1 %3630  ;;  %6022 = vmatmul.mubr.msk.f32.vlgmr.msra.gmra.mxu1 %vm288_vm2, %v6016_v61  ;;  %v3629_v13 = vpop.permute.xlu0 %3628 }
 0x13c   : > { %v3641_v14 = vsel %vm3636_vm11, %v3627_v62, %v3629_v13  ;;  %v3642_v15 = vsel %vm3636_vm11, %v3629_v13, %v3631_v12  ;;  %3941 = vmatprep.mubr.f32.mxu1 %v6222_v0 }
 0x13d   : > { %6023 = vmatprep.subr.msk.mxu0 %vm292_vm1, %v3642_v15 }
 0x13e   : > { %6024 = vmatpush1.msk.msra.mxu0 %vm292_vm1, %v3641_v14 }
 0x13f   : > { %v3635_v16 = vpop.permute.xlu1 %3634  ;;  %6025 = vmatmul.mubr.msk.f32.vlgmr.msra.gmra.mxu0 %vm288_vm2, %v6016_v61  ;;  %v3633_v17 = vpop.permute.xlu0 %3632 }
 0x140   : > { %v3643_v18 = vsel %vm3636_vm11, %v3631_v12, %v3633_v17  ;;  %v3644_v19 = vsel %vm3636_vm11, %v3633_v17, %v3635_v16  ;;  %4068 = vmatprep.mubr.f32.mxu0 %v6222_v0  ;;  %v6055_v17 = vld [vmem:[%s7277_s1 + $0x68] sm:$0xff] }
 0x141   : > { %6026 = vmatprep.subr.msk.mxu1 %vm292_vm1, %v3644_v19 }
 0x142   : > { %6027 = vmatpush1.msk.msra.mxu1 %vm292_vm1, %v3643_v18 }
 0x143   : > { %v3963_v20 = vpop.permute.xlu1 %3962  ;;  %6028 = vmatmul.mubr.msk.f32.vlgmr.msra.gmra.mxu1 %vm288_vm2, %v6016_v61  ;;  %v3961_v21 = vpop.permute.xlu0 %3960 }
 0x144   : > { %v3978_v22 = vsel %vm3976_vm12, %v3961_v21, %v3963_v20  ;;  %4139 = vmatprep.mubr.f32.mxu1 %v6222_v0 }
 0x145   : > { %6030 = vmatprep.subr.msk.mxu0 %vm292_vm1, %v3978_v22 }
 0x147   : > { %v3965_v23 = vpop.permute.xlu1 %3964  ;;  %v3959_v24 = vpop.permute.xlu0 %3958 }
 0x148   : > { %v3977_v26 = vsel %vm3976_vm12, %v3959_v24, %v3961_v21  ;;  %v3979_v30 = vsel %vm3976_vm12, %v3963_v20, %v3965_v23 }
 0x149   : > { %6031 = vmatpush1.msk.msra.mxu0 %vm292_vm1, %v3977_v26 }
 0x14a   : > { %6032 = vmatmul.mubr.msk.f32.vlgmr.msra.gmra.mxu0 %vm288_vm2, %v6029_v25 }
 0x14b   : > { %v3969_v27 = vpop.permute.xlu1 %3968  ;;  %v3967_v28 = vpop.permute.xlu0 %3966  ;;  %4210 = vmatprep.mubr.f32.mxu0 %v6222_v0 }
 0x14c   : > { %v3980_v29 = vsel %vm3976_vm12, %v3965_v23, %v3967_v28  ;;  %v3981_v34 = vsel %vm3976_vm12, %v3967_v28, %v3969_v27 }
 0x14d   : > { %6033 = vmatprep.subr.msk.mxu1 %vm292_vm1, %v3980_v29 }
 0x14e   : > { %6034 = vmatpush1.msk.msra.mxu1 %vm292_vm1, %v3979_v30 }
 0x14f   : > { %v3973_v31 = vpop.permute.xlu1 %3972  ;;  %6035 = vmatmul.mubr.msk.f32.vlgmr.msra.gmra.mxu1 %vm288_vm2, %v6029_v25  ;;  %v3971_v32 = vpop.permute.xlu0 %3970 }
 0x150   : > { %v3982_v33 = vsel %vm3976_vm12, %v3969_v27, %v3971_v32  ;;  %4281 = vmatprep.mubr.f32.mxu1 %v6222_v0  ;;  %v3983_v38 = vsel %vm3976_vm12, %v3971_v32, %v3973_v31 }
 0x151   : > { %6036 = vmatprep.subr.msk.mxu0 %vm292_vm1, %v3982_v33 }
 0x152   : > { %6037 = vmatpush1.msk.msra.mxu0 %vm292_vm1, %v3981_v34 }
 0x153   : > { %v4301_v35 = vpop.permute.xlu1 %4300  ;;  %6038 = vmatmul.mubr.msk.f32.vlgmr.msra.gmra.mxu0 %vm288_vm2, %v6029_v25  ;;  %v3975_v36 = vpop.permute.xlu0 %3974 }
 0x154   : > { %v3984_v37 = vsel %vm3976_vm12, %v3973_v31, %v3975_v36  ;;  %4408 = vmatprep.mubr.f32.mxu0 %v6222_v0 }
 0x155   : > { %6039 = vmatprep.subr.msk.mxu1 %vm292_vm1, %v3984_v37  ;;  %v446_v45 = vpop.f32.mrf.mxu1 }
 0x156   : > { %6040 = vmatpush1.msk.msra.mxu1 %vm292_vm1, %v3983_v38 }
 0x157   : > { %v4299_v39 = vpop.permute.xlu1 %4298  ;;  %6041 = vmatmul.mubr.msk.f32.vlgmr.msra.gmra.mxu1 %vm288_vm2, %v6029_v25  ;;  %v4303_v40 = vpop.permute.xlu0 %4302 }
 0x158   : > { %v4317_v41 = vsel %vm4316_vm13, %v4299_v39, %v4301_v35  ;;  %v4318_v42 = vsel %vm4316_vm13, %v4301_v35, %v4303_v40  ;;  %4479 = vmatprep.mubr.f32.mxu1 %v6222_v0  ;;  %v448_v3 = vpop.f32.mrf.mxu1 }
 0x159   : > { %6043 = vmatprep.subr.msk.mxu0 %vm292_vm1, %v4318_v42  ;;  %v375_v44 = vpop.f32.mrf.mxu0 }
 0x15a   : > { %6044 = vmatpush1.msk.msra.mxu0 %vm292_vm1, %v4317_v41 }
 0x15b   : > { %v4307_v46 = vpop.permute.xlu1 %4306  ;;  %6045 = vmatmul.mubr.msk.f32.vlgmr.msra.gmra.mxu0 %vm288_vm2, %v6042_v43  ;;  %v4305_v1 = vpop.permute.xlu0 %4304 }
 0x15c   : > { %v4319_v6 = vsel %vm4316_vm13, %v4303_v40, %v4305_v1  ;;  %v4320_v47 = vsel %vm4316_vm13, %v4305_v1, %v4307_v46  ;;  %4550 = vmatprep.mubr.f32.mxu0 %v6222_v0  ;;  %v377_v2 = vpop.f32.mrf.mxu0 }
 0x15d   : > { %6046 = vmatprep.subr.msk.mxu1 %vm292_vm1, %v4320_v47 }
 0x15e   : > { %6047 = vmatpush1.msk.msra.mxu1 %vm292_vm1, %v4319_v6  ;;  %v517_v48 = vpop.f32.mrf.mxu0 }
 0x15f   : > { %v4311_v49 = vpop.permute.xlu1 %4310  ;;  %6048 = vmatmul.mubr.msk.f32.vlgmr.msra.gmra.mxu1 %vm288_vm2, %v6042_v43  ;;  %v4309_v4 = vpop.permute.xlu0 %4308 }
 0x160   : > { %v4321_v5 = vsel %vm4316_vm13, %v4307_v46, %v4309_v4  ;;  %v4322_v50 = vsel %vm4316_vm13, %v4309_v4, %v4311_v49  ;;  %4621 = vmatprep.mubr.f32.mxu1 %v6222_v0  ;;  %v519_v51 = vpop.f32.mrf.mxu0 }
 0x161   : > { %6049 = vmatprep.subr.msk.mxu0 %vm292_vm1, %v4322_v50  ;;  %v588_v7 = vpop.f32.mrf.mxu1 }
 0x162   : > { %6050 = vmatpush1.msk.msra.mxu0 %vm292_vm1, %v4321_v5  ;;  %v678_v8 = vpop.f32.mrf.mxu0 }
 0x163   : > { %v4315_v52 = vpop.permute.xlu1 %4314  ;;  %6051 = vmatmul.mubr.msk.f32.vlgmr.msra.gmra.mxu0 %vm288_vm2, %v6042_v43  ;;  %v4313_v53 = vpop.permute.xlu0 %4312  ;;  %v679_v54 = vadd.f32 %v678_v8, %v375_v44 }
 0x164   : > { %v4323_v9 = vsel %vm4316_vm13, %v4311_v49, %v4313_v53  ;;  %v4324_v55 = vsel %vm4316_vm13, %v4313_v53, %v4315_v52  ;;  %4748 = vmatprep.mubr.f32.mxu0 %v6222_v0  ;;  %v590_v56 = vpop.f32.mrf.mxu1  ;;  %v680_v57 = vpop.f32.mrf.mxu0  ;;  %v6068_v52 = vld [vmem:[%s7277_s1 + $0x70] sm:$0xff] }
 0x165   : > { %6052 = vmatprep.subr.msk.mxu1 %vm292_vm1, %v4324_v55  ;;  %v681_v58 = vadd.f32 %v680_v57, %v377_v2 }
 0x166   : > { %6053 = vmatpush1.msk.msra.mxu1 %vm292_vm1, %v4323_v9  ;;  %v749_v59 = vpop.f32.mrf.mxu1 }
 0x167   : > { %v4643_v60 = vpop.permute.xlu1 %4642  ;;  %6054 = vmatmul.mubr.msk.f32.vlgmr.msra.gmra.mxu1 %vm288_vm2, %v6042_v43  ;;  %v4641_v61 = vpop.permute.xlu0 %4640  ;;  %v750_v62 = vadd.f32 %v749_v59, %v446_v45 }
 0x168   : > { %v4658_v63 = vsel %vm4656_vm14, %v4641_v61, %v4643_v60  ;;  %4819 = vmatprep.mubr.f32.mxu1 %v6222_v0  ;;  %v820_v10 = vpop.f32.mrf.mxu0  ;;  %v751_v11 = vpop.f32.mrf.mxu1 }
 0x169   : > { %6056 = vmatprep.subr.msk.mxu0 %vm292_vm1, %v4658_v63  ;;  %v821_v12 = vadd.f32 %v820_v10, %v517_v48  ;;  %v752_v13 = vadd.f32 %v751_v11, %v448_v3 }
 0x16a   : > { %v822_v14 = vpop.f32.mrf.mxu0 }
 0x16b   : > { %v4645_v15 = vpop.permute.xlu1 %4644  ;;  %v4639_v16 = vpop.permute.xlu0 %4638  ;;  %v823_v18 = vadd.f32 %v822_v14, %v519_v51 }
 0x16c   : > { %v4657_v19 = vsel %vm4656_vm14, %v4639_v16, %v4641_v61  ;;  %v891_v20 = vpop.f32.mrf.mxu1  ;;  %v4659_v31 = vsel %vm4656_vm14, %v4643_v60, %v4645_v15 }
 0x16d   : > { %6057 = vmatpush1.msk.msra.mxu0 %vm292_vm1, %v4657_v19  ;;  %v892_v21 = vadd.f32 %v891_v20, %v588_v7 }
 0x16e   : > { %6058 = vmatmul.mubr.msk.f32.vlgmr.msra.gmra.mxu0 %vm288_vm2, %v6055_v17  ;;  %v1010_v22 = vpop.f32.mrf.mxu0  ;;  %v893_v23 = vpop.f32.mrf.mxu1 }
 0x16f   : > { %v4649_v24 = vpop.permute.xlu1 %4648  ;;  %v4647_v25 = vpop.permute.xlu0 %4646  ;;  %4890 = vmatprep.mubr.f32.mxu0 %v6222_v0  ;;  %v1228_v26 = vadd.f32 %v1010_v22, %v679_v54  ;;  %v894_v27 = vadd.f32 %v893_v23, %v590_v56 }
 0x170   : > { %v4660_v28 = vsel %vm4656_vm14, %v4645_v15, %v4647_v25  ;;  %v1012_v29 = vpop.f32.mrf.mxu0  ;;  %v1081_v30 = vpop.f32.mrf.mxu1  ;;  %v4661_v43 = vsel %vm4656_vm14, %v4647_v25, %v4649_v24 }
 0x171   : > { %6059 = vmatprep.subr.msk.mxu1 %vm292_vm1, %v4660_v28  ;;  %v1229_v32 = vadd.f32 %v1012_v29, %v681_v58  ;;  %v1230_v33 = vadd.f32 %v1081_v30, %v750_v62 }
 0x172   : > { %6060 = vmatpush1.msk.msra.mxu1 %vm292_vm1, %v4659_v31  ;;  %v1152_v34 = vpop.f32.mrf.mxu0  ;;  %v1083_v35 = vpop.f32.mrf.mxu1 }
 0x173   : > { %v4653_v36 = vpop.permute.xlu1 %4652  ;;  %6061 = vmatmul.mubr.msk.f32.vlgmr.msra.gmra.mxu1 %vm288_vm2, %v6055_v17  ;;  %v4651_v37 = vpop.permute.xlu0 %4650  ;;  %v1232_v38 = vadd.f32 %v1152_v34, %v821_v12  ;;  %v1231_v39 = vadd.f32 %v1083_v35, %v752_v13 }
 0x174   : > { %v4662_v40 = vsel %vm4656_vm14, %v4649_v24, %v4651_v37  ;;  %4961 = vmatprep.mubr.f32.mxu1 %v6222_v0  ;;  %v1154_v41 = vpop.f32.mrf.mxu0  ;;  %v1223_v42 = vpop.f32.mrf.mxu1  ;;  %v4663_v48 = vsel %vm4656_vm14, %v4651_v37, %v4653_v36 }
 0x175   : > { %6062 = vmatprep.subr.msk.mxu0 %vm292_vm1, %v4662_v40  ;;  %v1233_v44 = vadd.f32 %v1154_v41, %v823_v18  ;;  %v1234_v45 = vadd.f32 %v1223_v42, %v892_v21 }
 0x176   : > { %6063 = vmatpush1.msk.msra.mxu0 %vm292_vm1, %v4661_v43  ;;  %v1225_v46 = vpop.f32.mrf.mxu1 }
 0x177   : > { %v4981_v1 = vpop.permute.xlu1 %4980  ;;  %6064 = vmatmul.mubr.msk.f32.vlgmr.msra.gmra.mxu0 %vm288_vm2, %v6055_v17  ;;  %v4655_v6 = vpop.permute.xlu0 %4654  ;;  %v1235_v47 = vadd.f32 %v1225_v46, %v894_v27 }
 0x178   : > { %v4664_v2 = vsel %vm4656_vm14, %v4653_v36, %v4655_v6  ;;  %5088 = vmatprep.mubr.f32.mxu0 %v6222_v0  ;;  %v1350_v3 = vpop.f32.mrf.mxu0 }
 0x179   : > { %6065 = vmatprep.subr.msk.mxu1 %vm292_vm1, %v4664_v2  ;;  %v1568_v49 = vadd.f32 %v1350_v3, %v1228_v26 }
 0x17a   : > { %6066 = vmatpush1.msk.msra.mxu1 %vm292_vm1, %v4663_v48  ;;  %v1352_v4 = vpop.f32.mrf.mxu0 }
 0x17b   : > { %v4979_v5 = vpop.permute.xlu1 %4978  ;;  %6067 = vmatmul.mubr.msk.f32.vlgmr.msra.gmra.mxu1 %vm288_vm2, %v6055_v17  ;;  %v4983_v50 = vpop.permute.xlu0 %4982  ;;  %v1569_v51 = vadd.f32 %v1352_v4, %v1229_v32  ;;  %v6081_v32 = vld [vmem:[%s7277_s1 + $0x78] sm:$0xff] }
 0x17c   : > { %v4997_v7 = vsel %vm4996_vm15, %v4979_v5, %v4981_v1  ;;  %v4998_v8 = vsel %vm4996_vm15, %v4981_v1, %v4983_v50  ;;  %5159 = vmatprep.mubr.f32.mxu1 %v6222_v0 }
 0x17d   : > { %6069 = vmatprep.subr.msk.mxu0 %vm292_vm1, %v4998_v8 }
 0x17e   : > { %6070 = vmatpush1.msk.msra.mxu0 %vm292_vm1, %v4997_v7  ;;  %v1421_v53 = vpop.f32.mrf.mxu1 }
 0x17f   : > { %v4987_v54 = vpop.permute.xlu1 %4986  ;;  %6071 = vmatmul.mubr.msk.f32.vlgmr.msra.gmra.mxu0 %vm288_vm2, %v6068_v52  ;;  %v4985_v9 = vpop.permute.xlu0 %4984  ;;  %v1570_v55 = vadd.f32 %v1421_v53, %v1230_v33 }
 0x180   : > { %v4999_v56 = vsel %vm4996_vm15, %v4983_v50, %v4985_v9  ;;  %v5000_v57 = vsel %vm4996_vm15, %v4985_v9, %v4987_v54  ;;  %5230 = vmatprep.mubr.f32.mxu0 %v6222_v0  ;;  %v1423_v58 = vpop.f32.mrf.mxu1 }
 0x181   : > { %6072 = vmatprep.subr.msk.mxu1 %vm292_vm1, %v5000_v57  ;;  %v1571_v59 = vadd.f32 %v1423_v58, %v1231_v39 }
 0x182   : > { %6073 = vmatpush1.msk.msra.mxu1 %vm292_vm1, %v4999_v56  ;;  %v1492_v60 = vpop.f32.mrf.mxu0 }
 0x183   : > { %v4991_v61 = vpop.permute.xlu1 %4990  ;;  %6074 = vmatmul.mubr.msk.f32.vlgmr.msra.gmra.mxu1 %vm288_vm2, %v6068_v52  ;;  %v4989_v62 = vpop.permute.xlu0 %4988  ;;  %v1572_v63 = vadd.f32 %v1492_v60, %v1232_v38 }
 0x184   : > { %v5001_v10 = vsel %vm4996_vm15, %v4987_v54, %v4989_v62  ;;  %v5002_v11 = vsel %vm4996_vm15, %v4989_v62, %v4991_v61  ;;  %5301 = vmatprep.mubr.f32.mxu1 %v6222_v0  ;;  %v1494_v12 = vpop.f32.mrf.mxu0 }
 0x185   : > { %6075 = vmatprep.subr.msk.mxu0 %vm292_vm1, %v5002_v11  ;;  %v1573_v13 = vadd.f32 %v1494_v12, %v1233_v44 }
 0x186   : > { %6076 = vmatpush1.msk.msra.mxu0 %vm292_vm1, %v5001_v10  ;;  %v1563_v14 = vpop.f32.mrf.mxu1 }
 0x187   : > { %v4995_v15 = vpop.permute.xlu1 %4994  ;;  %6077 = vmatmul.mubr.msk.f32.vlgmr.msra.gmra.mxu0 %vm288_vm2, %v6068_v52  ;;  %v4993_v16 = vpop.permute.xlu0 %4992  ;;  %v1574_v17 = vadd.f32 %v1563_v14, %v1234_v45 }
 0x188   : > { %v5003_v18 = vsel %vm4996_vm15, %v4991_v61, %v4993_v16  ;;  %v5004_v19 = vsel %vm4996_vm15, %v4993_v16, %v4995_v15  ;;  %5428 = vmatprep.mubr.f32.mxu0 %v6222_v0  ;;  %v1565_v20 = vpop.f32.mrf.mxu1 }
 0x189   : > { %6078 = vmatprep.subr.msk.mxu1 %vm292_vm1, %v5004_v19  ;;  %v1575_v21 = vadd.f32 %v1565_v20, %v1235_v47 }
 0x18a   : > { %6079 = vmatpush1.msk.msra.mxu1 %vm292_vm1, %v5003_v18  ;;  %v1690_v22 = vpop.f32.mrf.mxu0 }
 0x18b   : > { %v5323_v23 = vpop.permute.xlu1 %5322  ;;  %6080 = vmatmul.mubr.msk.f32.vlgmr.msra.gmra.mxu1 %vm288_vm2, %v6068_v52  ;;  %v5321_v24 = vpop.permute.xlu0 %5320  ;;  %v6964_v25 = vadd.f32 %v1690_v22, %v1568_v49 }
 0x18c   : > { %v5338_v26 = vsel %vm5336_vm0, %v5321_v24, %v5323_v23  ;;  %5499 = vmatprep.mubr.f32.mxu1 %v6222_v0  ;;  %v1692_v27 = vpop.f32.mrf.mxu0 }
 0x18d   : > { %6082 = vmatprep.subr.msk.mxu0 %vm292_vm1, %v5338_v26  ;;  %v6969_v28 = vadd.f32 %v1692_v27, %v1569_v51 }
 0x18e   : > { %v1761_v29 = vpop.f32.mrf.mxu1 }
 0x18f   : > { %v5325_v30 = vpop.permute.xlu1 %5324  ;;  %v5319_v31 = vpop.permute.xlu0 %5318  ;;  %v6974_v33 = vadd.f32 %v1761_v29, %v1570_v55 }
 0x190   : > { %v5337_v34 = vsel %vm5336_vm0, %v5319_v31, %v5321_v24  ;;  %v1763_v35 = vpop.f32.mrf.mxu1  ;;  %v5339_v43 = vsel %vm5336_vm0, %v5323_v23, %v5325_v30 }
 0x191   : > { %6083 = vmatpush1.msk.msra.mxu0 %vm292_vm1, %v5337_v34  ;;  %v6978_v36 = vadd.f32 %v1763_v35, %v1571_v59 }
 0x192   : > { %6084 = vmatmul.mubr.msk.f32.vlgmr.msra.gmra.mxu0 %vm288_vm2, %v6081_v32  ;;  %v1832_v37 = vpop.f32.mrf.mxu0 }
 0x193   : > { %v5327_v38 = vpop.permute.xlu0 %5326  ;;  %5570 = vmatprep.mubr.f32.mxu0 %v6222_v0  ;;  %v1912_v39 = vadd.f32 %v1832_v37, %v1572_v63  ;;  %v5329_v40 = vpop.permute.xlu1 %5328 }
 0x194   : > { %v5340_v41 = vsel %vm5336_vm0, %v5325_v30, %v5327_v38  ;;  %v1834_v42 = vpop.f32.mrf.mxu0  ;;  %v5341_v2 = vsel %vm5336_vm0, %v5327_v38, %v5329_v40 }
 0x195   : > { %6085 = vmatprep.subr.msk.mxu1 %vm292_vm1, %v5340_v41  ;;  %v1913_v44 = vadd.f32 %v1834_v42, %v1573_v13 }
 0x196   : > { %6086 = vmatpush1.msk.msra.mxu1 %vm292_vm1, %v5339_v43  ;;  %v1903_v45 = vpop.f32.mrf.mxu1 }
 0x197   : > { %6087 = vmatmul.mubr.msk.f32.vlgmr.msra.gmra.mxu1 %vm288_vm2, %v6081_v32  ;;  %v5331_v46 = vpop.permute.xlu0 %5330  ;;  %v1914_v1 = vadd.f32 %v1903_v45, %v1574_v17  ;;  %v5333_v48 = vpop.permute.xlu1 %5332 }
 0x198   : > { %v5342_v6 = vsel %vm5336_vm0, %v5329_v40, %v5331_v46  ;;  %5641 = vmatprep.mubr.f32.mxu1 %v6222_v0  ;;  %v1905_v47 = vpop.f32.mrf.mxu1  ;;  %v5343_v5 = vsel %vm5336_vm0, %v5331_v46, %v5333_v48 }
 0x199   : > { %6088 = vmatprep.subr.msk.mxu0 %vm292_vm1, %v5342_v6  ;;  %v1915_v3 = vadd.f32 %v1905_v47, %v1575_v21 }
 0x19a   : > { %6089 = vmatpush1.msk.msra.mxu0 %vm292_vm1, %v5341_v2 }
 0x19b   : > { %6090 = vmatmul.mubr.msk.f32.vlgmr.msra.gmra.mxu0 %vm288_vm2, %v6081_v32  ;;  %v5335_v49 = vpop.permute.xlu0 %5334 }
 0x19c   : > { %v5344_v4 = vsel %vm5336_vm0, %v5333_v48, %v5335_v49  ;;  %v6997_v0 = vpop.f32.mrf.mxu0 }
 0x19d   : > { %6091 = vmatprep.subr.msk.mxu1 %vm292_vm1, %v5344_v4 }
 0x19e   : > { %6092 = vmatpush1.msk.msra.mxu1 %vm292_vm1, %v5343_v5  ;;  %v7000_v50 = vpop.f32.mrf.mxu0 }
 0x19f   : > { %6093 = vmatmul.mubr.msk.f32.vlgmr.msra.gmra.mxu1 %vm288_vm2, %v6081_v32 }
 0x1a2   : > { %v7002_v51 = vpop.f32.mrf.mxu1 }
 0x1a4   : > { %v7004_v8 = vpop.f32.mrf.mxu1 }
 0x1a6   : > { %v2172_v7 = vpop.f32.mrf.mxu0 }
 0x1a7   : > { %v7006_v52 = vadd.f32 %v2172_v7, %v1912_v39 }
 0x1a8   : > { %v2174_v53 = vpop.f32.mrf.mxu0 }
 0x1a9   : > { %v7008_v54 = vadd.f32 %v2174_v53, %v1913_v44 }
 0x1aa   : > { %v2243_v9 = vpop.f32.mrf.mxu1 }
 0x1ab   : > { %v7010_v55 = vadd.f32 %v2243_v9, %v1914_v1 }
 0x1ac   : > { %v2245_v56 = vpop.f32.mrf.mxu1 }
 0x1ad   : > { %v7012_v57 = vadd.f32 %v2245_v56, %v1915_v3 }
 0x1ae   : > { %v2370_v58 = vpop.f32.mrf.mxu0 }
 0x1b0   : > { %v2372_v59 = vpop.f32.mrf.mxu0 }
 0x1b2   : > { %v7014_v60 = vpop.f32.mrf.mxu1 }
 0x1b4   : > { %v7018_v62 = vpop.f32.mrf.mxu1 }
 0x1b6   : > { %v7016_v61 = vpop.f32.mrf.mxu0 }
 0x1b8   : > { %v7020_v63 = vpop.f32.mrf.mxu0 }
 0x1ba   : > { %v7022_v10 = vpop.f32.mrf.mxu1 }
 0x1bc   : > { %v7024_v12 = vpop.f32.mrf.mxu1 }
 0x1c0   : > { %v2710_v11 = vpop.f32.mrf.mxu0 }
 0x1c2   : > { %v2712_v13 = vpop.f32.mrf.mxu0 }
 0x1c6   : > { %v7026_v14 = vpop.f32.mrf.mxu1 }
 0x1c8   : > { %v7030_v16 = vpop.f32.mrf.mxu1 }
 0x1cb   : > { %v7028_v15 = vpop.f32.mrf.mxu0 }
 0x1cd   : > { %v7032_v17 = vpop.f32.mrf.mxu0 }
 0x1cf   : > { %v7034_v18 = vpop.f32.mrf.mxu1 }
 0x1d1   : > { %v7036_v20 = vpop.f32.mrf.mxu1 }
 0x1d3   : > { %v3050_v19 = vpop.f32.mrf.mxu0 }
 0x1d5   : > { %v3052_v21 = vpop.f32.mrf.mxu0 }
 0x1d7   : > { %v7038_v22 = vpop.f32.mrf.mxu1 }
 0x1d9   : > { %v7042_v24 = vpop.f32.mrf.mxu1 }
 0x1db   : > { %v7040_v23 = vpop.f32.mrf.mxu0 }
 0x1dd   : > { %v7044_v26 = vpop.f32.mrf.mxu0 }
 0x1e0   : > { %v7046_v27 = vpop.f32.mrf.mxu1 }
 0x1e2   : > { %v7048_v30 = vpop.f32.mrf.mxu1 }
 0x1e7   : > { %v3390_v29 = vpop.f32.mrf.mxu0 }
 0x1e9   : > { %v7050_v31 = vpop.f32.mrf.mxu0 }
 0x1eb   : > { %v7052_v32 = vpop.f32.mrf.mxu1 }
 0x1ed   : > { %v7056_v35 = vpop.f32.mrf.mxu1 }
 0x1ef   : > { %v7054_v34 = vpop.f32.mrf.mxu0 }
 0x1f1   : > { %v7058_v37 = vpop.f32.mrf.mxu0 }
 0x1f3   : > { %v7060_v38 = vpop.f32.mrf.mxu1 }
 0x1f4   : > { %7284 = vst [vmem:[#allocation5_spill] sm:$0xff] %v7060_v38 }
 0x1f5   : > { %v7062_v40 = vpop.f32.mrf.mxu1 }
 0x1f6   : > { %7285 = vst [vmem:[#allocation6_spill] sm:$0xff] %v7062_v40  ;;  %v2250_v40 = vadd.f32 %v7002_v51, %v6974_v33 }
 0x1f7   : > { %v3730_v39 = vpop.f32.mrf.mxu0 }
 0x1f9   : > { %v7064_v41 = vpop.f32.mrf.mxu0 }
 0x1fb   : > { %v7066_v42 = vpop.f32.mrf.mxu1 }
 0x1fd   : > { %v7070_v44 = vpop.f32.mrf.mxu1 }
 0x1ff   : > { %v7068_v43 = vpop.f32.mrf.mxu0 }
 0x201   : > { %v7072_v45 = vpop.f32.mrf.mxu0 }
 0x202   : > { %7286 = vst [vmem:[#allocation7_spill] sm:$0xff] %v7072_v45 }
 0x203   : > { %v7074_v46 = vpop.f32.mrf.mxu1 }
 0x204   : > { %7287 = vst [vmem:[#allocation8_spill] sm:$0xff] %v7074_v46 }
 0x205   : > { %v7076_v6 = vpop.f32.mrf.mxu1 }
 0x206   : > { %7288 = vst [vmem:[#allocation9_spill] sm:$0xff] %v7076_v6  ;;  %v2248_v6 = vadd.f32 %v6997_v0, %v6964_v25  ;;  %v2251_v25 = vadd.f32 %v7004_v8, %v6978_v36 }
 0x20a   : > { %v4070_v1 = vpop.f32.mrf.mxu0 }
 0x20c   : > { %v7078_v47 = vpop.f32.mrf.mxu0 }
 0x20f   : > { %v7080_v2 = vpop.f32.mrf.mxu1 }
 0x211   : > { %v7084_v48 = vpop.f32.mrf.mxu1 }
 0x213   : > { %v7082_v3 = vpop.f32.mrf.mxu0 }
 0x214   : > { %7289 = vst [vmem:[#allocation10_spill] sm:$0xff] %v7082_v3 }
 0x215   : > { %v7086_v49 = vpop.f32.mrf.mxu0 }
 0x216   : > { %7290 = vst [vmem:[#allocation11_spill] sm:$0xff] %v7086_v49  ;;  %v2249_v49 = vadd.f32 %v7000_v50, %v6969_v28  ;;  %v2590_v28 = vadd.f32 %v7014_v60, %v2250_v40 }
 0x217   : > { %v7088_v4 = vpop.f32.mrf.mxu1 }
 0x218   : > { %7291 = vst [vmem:[#allocation12_spill] sm:$0xff] %v7088_v4  ;;  %v2589_v38 = vadd.f32 %v2372_v59, %v2249_v49  ;;  %v2592_v59 = vadd.f32 %v7016_v61, %v7006_v52  ;;  %v2930_v36 = vadd.f32 %v7026_v14, %v2590_v28  ;;  %v2595_v52 = vadd.f32 %v7024_v12, %v7012_v57 }
 0x219   : > { %v7090_v7 = vpop.f32.mrf.mxu1 }
 0x21a   : > { %7292 = vst [vmem:[#allocation13_spill] sm:$0xff] %v7090_v7  ;;  %v2588_v7 = vadd.f32 %v2370_v58, %v2248_v6  ;;  %v2929_v58 = vadd.f32 %v2712_v13, %v2589_v38  ;;  %v2591_v6 = vadd.f32 %v7018_v62, %v2251_v25  ;;  %v2593_v13 = vadd.f32 %v7020_v63, %v7008_v54  ;;  %v7149_v63 = vld [vmem:[%s7278_s2] sm:$0xff] }
 0x21b   : > { %v4410_v5 = vpop.f32.mrf.mxu0  ;;  %v2594_v38 = vadd.f32 %v7022_v10, %v7010_v55  ;;  %v2932_v61 = vadd.f32 %v7028_v15, %v2592_v59  ;;  %v3270_v14 = vadd.f32 %v7038_v22, %v2930_v36  ;;  %v2935_v25 = vadd.f32 %v7036_v20, %v2595_v52 }
 0x21c   : > { %v3269_v49 = vadd.f32 %v3052_v21, %v2929_v58  ;;  %v2931_v62 = vadd.f32 %v7030_v16, %v2591_v6  ;;  %v2933_v57 = vadd.f32 %v7032_v17, %v2593_v13 }
 0x21d   : > { %v7092_v53 = vpop.f32.mrf.mxu0  ;;  %v2934_v22 = vadd.f32 %v7034_v18, %v2594_v38  ;;  %v3272_v17 = vadd.f32 %v7040_v23, %v2932_v61 }
 0x21e   : > { %v3271_v10 = vadd.f32 %v7042_v24, %v2931_v62  ;;  %v3610_v24 = vadd.f32 %v7052_v32, %v3270_v14 }
 0x21f   : > { %v7094_v9 = vpop.f32.mrf.mxu1  ;;  %v3274_v32 = vadd.f32 %v7046_v27, %v2934_v22  ;;  %v7302_v22 = vld [vmem:[#allocation8_spill] sm:$0xff] }
 0x220   : > { %7293 = vst [vmem:[#allocation14_spill] sm:$0xff] %v7094_v9  ;;  %v3950_v59 = vadd.f32 %v7066_v42, %v3610_v24  ;;  %v3612_v42 = vadd.f32 %v7054_v34, %v3272_v17  ;;  %v7304_v24 = vld [vmem:[#allocation11_spill] sm:$0xff] }
 0x221   : > { %v7100_v46 = vpop.f32.mrf.mxu1 }
 0x222   : > { %v4290_v62 = vadd.f32 %v7080_v2, %v3950_v59  ;;  %v3952_v34 = vadd.f32 %v7068_v43, %v3612_v42  ;;  %v7306_v59 = vld [vmem:[#allocation12_spill] sm:$0xff] }
 0x223   : > { %v7096_v56 = vpop.f32.mrf.mxu0 }
 0x224   : > { %7294 = vst [vmem:[#allocation15_spill] sm:$0xff] %v7096_v56  ;;  %v2928_v56 = vadd.f32 %v2710_v11, %v2588_v7 }
 0x225   : > { %v7102_v3 = vpop.f32.mrf.mxu0 }
 0x226   : > { %7295 = vst [vmem:[#allocation16_spill] sm:$0xff] %v7102_v3  ;;  %v3268_v33 = vadd.f32 %v3050_v19, %v2928_v56 }
 0x227   : > { %v7106_v4 = vpop.f32.mrf.mxu1  ;;  %v7297_v61 = vld [vmem:[#allocation14_spill] sm:$0xff] }
 0x228   : > { %7296 = vst [vmem:[#allocation17_spill] sm:$0xff] %v7106_v4  ;;  %v5658_v4 = vlaneseq  ;;  %v3608_v40 = vadd.f32 %v3390_v29, %v3268_v33  ;;  %v4630_v2 = vadd.f32 %v7297_v61, %v4290_v62 }
 0x229   : > { %v7110_v9 = vpop.f32.mrf.mxu1 }
 0x22a   : > { %v7129_v11 = vshrl.u32 %v5658_v4, 7  ;;  %v3609_v4 = vadd.f32 %v7050_v31, %v3269_v49  ;;  %v3948_v7 = vadd.f32 %v3730_v39, %v3608_v40  ;;  %v3275_v40 = vadd.f32 %v7048_v30, %v2935_v25 }
 0x22c   : > { %v5660_v21 = vsub.s32 0, %v7129_v11  ;;  %v5664_v55 = vsub.s32 1, %v7129_v11  ;;  %v5668_v15 = vsub.s32 2, %v7129_v11  ;;  %v5672_v16 = vsub.s32 3, %v7129_v11 }
 0x22d   : > { %v3949_v29 = vadd.f32 %v7064_v41, %v3609_v4  ;;  %v4288_v31 = vadd.f32 %v4070_v1, %v3948_v7  ;;  %v5676_v56 = vsub.s32 4, %v7129_v11  ;;  %v5680_v41 = vsub.s32 5, %v7129_v11  ;;  %v7299_v4 = vld [vmem:[#allocation6_spill] sm:$0xff] }
 0x22e   : > { %v4750_v45 = vpop.f32.mrf.mxu0  ;;  %v5661_v58 = vrot.slane %v7149_v63, %v5660_v21  ;;  %v5665_v33 = vrot.slane %v7149_v63, %v5664_v55  ;;  %v3611_v1 = vadd.f32 %v7056_v35, %v3271_v10  ;;  %v5669_v20 = vrot.slane %v7149_v63, %v5668_v15  ;;  %v7298_v21 = vld [vmem:[#allocation5_spill] sm:$0xff]  ;;  %v7300_v55 = vld [vmem:[#allocation7_spill] sm:$0xff]  ;;  %v7301_v10 = vld [vmem:[#allocation10_spill] sm:$0xff] }
 0x22f   : > { %v4289_v6 = vadd.f32 %v7078_v47, %v3949_v29  ;;  %v4628_v18 = vadd.f32 %v4410_v5, %v4288_v31  ;;  %v7173_v23 = vrot.slane %v7149_v63, %v5672_v16  ;;  %v7178_v49 = vrot.slane %v7149_v63, %v5676_v56  ;;  %v7303_v29 = vld [vmem:[#allocation9_spill] sm:$0xff] }
 0x230   : > { %v7114_v0 = vpop.f32.mrf.mxu0  ;;  %v3273_v35 = vadd.f32 %v7044_v26, %v2933_v57  ;;  %v3951_v13 = vadd.f32 %v7070_v44, %v3611_v1  ;;  %v3614_v30 = vadd.f32 %v7298_v21, %v3274_v32  ;;  %v4292_v15 = vadd.f32 %v7301_v10, %v3952_v34 }
 0x231   : > { %v4629_v47 = vadd.f32 %v7092_v53, %v4289_v6  ;;  %v4968_v5 = vadd.f32 %v4750_v45, %v4628_v18  ;;  %v7189_v45 = vrot.slane %v7149_v63, %v5680_v41 }
 0x232   : > { %v3613_v26 = vadd.f32 %v7058_v37, %v3273_v35  ;;  %v4291_v44 = vadd.f32 %v7084_v48, %v3951_v13  ;;  %v3954_v48 = vadd.f32 %v7302_v22, %v3614_v30  ;;  %v7308_v35 = vld [vmem:[#allocation16_spill] sm:$0xff] }
 0x233   : > { %v7116_v3 = vpop.f32.mrf.mxu1  ;;  %v4969_v27 = vadd.f32 %v7114_v0, %v4629_v47  ;;  %v3615_v0 = vadd.f32 %v7299_v4, %v3275_v40 }
 0x234   : > { %v3953_v57 = vadd.f32 %v7300_v55, %v3613_v26  ;;  %v4631_v16 = vadd.f32 %v7100_v46, %v4291_v44  ;;  %v4970_v37 = vadd.f32 %v7116_v3, %v4630_v2  ;;  %v4294_v32 = vadd.f32 %v7306_v59, %v3954_v48  ;;  %v7307_v46 = vld [vmem:[#allocation13_spill] sm:$0xff] }
 0x235   : > { %v7122_v51 = vpop.f32.mrf.mxu1  ;;  %v3955_v31 = vadd.f32 %v7303_v29, %v3615_v0  ;;  %v5688_v2 = vsub.s32 7, %v7129_v11 }
 0x236   : > { %v4293_v6 = vadd.f32 %v7304_v24, %v3953_v57  ;;  %v4971_v41 = vadd.f32 %v7122_v51, %v4631_v16 }
 0x237   : > { %v7119_v50 = vpop.f32.mrf.mxu0  ;;  %v4295_v47 = vadd.f32 %v7307_v46, %v3955_v31 }
 0x238   : > { %v4633_v42 = vadd.f32 %v7308_v35, %v4293_v6 }
 0x239   : > { %v7127_v8 = vpop.f32.mrf.mxu0 }
 0x23b   : > { %v7131_v60 = vpop.f32.mrf.mxu1 }
 0x23d   : > { %v7144_v54 = vpop.f32.mrf.mxu1 }
 0x23f   : > { %v5090_v19 = vpop.f32.mrf.mxu0 }
 0x240   : > { %v5308_v52 = vadd.f32 %v5090_v19, %v4968_v5 }
 0x241   : > { %v5092_v12 = vpop.f32.mrf.mxu0 }
 0x242   : > { %v5309_v19 = vadd.f32 %v5092_v12, %v4969_v27  ;;  %v7305_v12 = vld [vmem:[#allocation15_spill] sm:$0xff] }
 0x243   : > { %v5161_v39 = vpop.f32.mrf.mxu1  ;;  %v4632_v18 = vadd.f32 %v7305_v12, %v4292_v15 }
 0x244   : > { %v5310_v1 = vadd.f32 %v5161_v39, %v4970_v37  ;;  %v7309_v39 = vld [vmem:[#allocation17_spill] sm:$0xff]  ;;  %v5689_v37 = vrot.slane %v7149_v63, %v5688_v2 }
 0x245   : > { %v5163_v36 = vpop.f32.mrf.mxu1  ;;  %v4972_v13 = vadd.f32 %v7119_v50, %v4632_v18  ;;  %v4634_v40 = vadd.f32 %v7309_v39, %v4294_v32  ;;  %v4973_v50 = vadd.f32 %v7127_v8, %v4633_v42 }
 0x246   : > { %v5311_v62 = vadd.f32 %v5163_v36, %v4971_v41 }
 0x247   : > { %v7162_v28 = vpop.f32.mrf.mxu0  ;;  %v4974_v36 = vadd.f32 %v7131_v60, %v4634_v40 }
 0x248   : > { %v5312_v44 = vadd.f32 %v7162_v28, %v4972_v13 }
 0x249   : > { %v5234_v38 = vpop.f32.mrf.mxu0 }
 0x24b   : > { %v5303_v53 = vpop.f32.mrf.mxu1 }
 0x24d   : > { %v5305_v56 = vpop.f32.mrf.mxu1 }
 0x252   : > { %v5430_v14 = vpop.f32.mrf.mxu0 }
 0x253   : > { %v5648_v7 = vadd.f32 %v5430_v14, %v5308_v52  ;;  %v4635_v14 = vadd.f32 %v7110_v9, %v4295_v47 }
 0x254   : > { %v5432_v43 = vpop.f32.mrf.mxu0 }
 0x255   : > { %v5698_v25 = vmul.f32 %v5661_v58, %v5648_v7  ;;  %v5649_v17 = vadd.f32 %v5432_v43, %v5309_v19  ;;  %v5684_v58 = vsub.s32 6, %v7129_v11  ;;  %v4975_v28 = vadd.f32 %v7144_v54, %v4635_v14 }
 0x256   : > { %v5314_v11 = vadd.f32 %v5303_v53, %v4974_v36 }
 0x257   : > { %5706 = vst [vmem:[%s7208_s16] sm:$0xff] %v5698_v25  ;;  %v5699_v3 = vmul.f32 %v5665_v33, %v5649_v17  ;;  %v5501_v5 = vpop.f32.mrf.mxu1  ;;  %v5725_v27 = vmul.f32 %v5698_v25, %v5698_v25  ;;  %v5685_v9 = vrot.slane %v7149_v63, %v5684_v58  ;;  %v5315_v15 = vadd.f32 %v5305_v56, %v4975_v28 }
 0x258   : > { %v5650_v51 = vadd.f32 %v5501_v5, %v5310_v1 }
 0x259   : > { %5707 = vst [vmem:[%s7208_s16 + $0x8] sm:$0xff] %v5699_v3  ;;  %v5714_v52 = vadd.f32 %v5699_v3, %v5698_v25  ;;  %v5726_v26 = vmul.f32 %v5699_v3, %v5699_v3  ;;  %v5503_v34 = vpop.f32.mrf.mxu1 }
 0x25a   : > { %v5700_v33 = vmul.f32 %v5669_v20, %v5650_v51  ;;  %v5651_v61 = vadd.f32 %v5503_v34, %v5311_v62  ;;  %v5313_v20 = vadd.f32 %v5234_v38, %v4973_v50 }
 0x25b   : > { %v5733_v21 = vadd.f32 %v5726_v26, %v5725_v27  ;;  %v5572_v30 = vpop.f32.mrf.mxu0 }
 0x25c   : > { %5708 = vst [vmem:[%s7208_s16 + $0x10] sm:$0xff] %v5700_v33  ;;  %v5715_v4 = vadd.f32 %v5714_v52, %v5700_v33  ;;  %v5727_v0 = vmul.f32 %v5700_v33, %v5700_v33  ;;  %v5701_v19 = vmul.f32 %v7173_v23, %v5651_v61  ;;  %v5652_v7 = vadd.f32 %v5572_v30, %v5312_v44 }
 0x25d   : > { %v5574_v55 = vpop.f32.mrf.mxu0 }
 0x25e   : > { %v5734_v57 = vadd.f32 %v5733_v21, %v5727_v0  ;;  %5709 = vst [vmem:[%s7208_s16 + $0x18] sm:$0xff] %v5701_v19  ;;  %v5716_v8 = vadd.f32 %v5715_v4, %v5701_v19  ;;  %v5728_v60 = vmul.f32 %v5701_v19, %v5701_v19  ;;  %v5702_v10 = vmul.f32 %v7178_v49, %v5652_v7 }
 0x25f   : > { %v5653_v16 = vadd.f32 %v5574_v55, %v5313_v20  ;;  %v5643_v23 = vpop.f32.mrf.mxu1 }
 0x260   : > { %v5735_v43 = vadd.f32 %v5734_v57, %v5728_v60  ;;  %5710 = vst [vmem:[%s7208_s16 + $0x20] sm:$0xff] %v5702_v10  ;;  %v5717_v54 = vadd.f32 %v5716_v8, %v5702_v10  ;;  %v5729_v38 = vmul.f32 %v5702_v10, %v5702_v10  ;;  %v5654_v53 = vadd.f32 %v5643_v23, %v5314_v11 }
 0x261   : > { %v5703_v22 = vmul.f32 %v7189_v45, %v5653_v16  ;;  %v5645_v48 = vpop.f32.mrf.mxu1 }
 0x262   : > { %v5736_v29 = vadd.f32 %v5735_v43, %v5729_v38  ;;  %v5704_v31 = vmul.f32 %v5685_v9, %v5654_v53  ;;  %v5655_v25 = vadd.f32 %v5645_v48, %v5315_v15 }
 0x263   : > { %5711 = vst [vmem:[%s7208_s16 + $0x28] sm:$0xff] %v5703_v22  ;;  %v5718_v49 = vadd.f32 %v5717_v54, %v5703_v22  ;;  %v5730_v56 = vmul.f32 %v5703_v22, %v5703_v22 }
 0x264   : > { %5712 = vst [vmem:[%s7208_s16 + $0x30] sm:$0xff] %v5704_v31  ;;  %v5731_v63 = vmul.f32 %v5704_v31, %v5704_v31  ;;  %v5705_v17 = vmul.f32 %v5689_v37, %v5655_v25 }
 0x265   : > { %v5719_v24 = vadd.f32 %v5718_v49, %v5704_v31  ;;  %v5737_v6 = vadd.f32 %v5736_v29, %v5730_v56 }
 0x266   : > { %5713 = vst [vmem:[%s7208_s16 + $0x38] sm:$0xff] %v5705_v17  ;;  %v5732_v12 = vmul.f32 %v5705_v17, %v5705_v17 }
 0x267   : > { %v5720_v18 = vadd.f32 %v5719_v24, %v5705_v17  ;;  %v5738_v45 = vadd.f32 %v5737_v6, %v5731_v63 }
 0x269   : > { %5721 = vadd.xlane.f32.xlu1 %v5720_v18  ;;  %v5739_v41 = vadd.f32 %v5738_v45, %v5732_v12 }
 0x26b   : > { %5740 = vadd.xlane.f32.xlu0 %v5739_v41 }
 0x26c   : > { %6173 = shalt.err (!%p6170_p3)
}
 0x26d   : > { %s6174_s22 = scalar_lea.hbm %s5764_s26, 1024  ;;  %s6178_s14 = scalar_lea.hbm %s7279_s3, 2048 }
 0x26e   : > { %p6175_p4 = scmp.ne.s32.totalorder %s5764_s26, %s6174_s22  ;;  %p6179_p9 = scmp.lt.s32.totalorder %s5764_s26, %s7279_s3 }
 0x26f   : > { %p6180_p10 = scmp.lt.s32.totalorder %s6178_s14, %s6174_s22 }
 0x270   : > { %p6176_p7 = pnand %p6175_p4, %p6307_p5 }
 0x271   : > { %p6181_p11 = por %p6180_p10, %p6179_p9 }
 0x272   : > { %p6177_p8 = pneg %p6176_p7 }
 0x274   : > { %p6182_p12 = pnand %p6181_p11, %p6177_p8 }
 0x276   : > { %6185 = shalt.err (!%p6182_p12)
}
 0x277   : > { %6101 = dma.vmem_to_hbm [thread:$0]  (%p6307_p5), %s5767_s6, 1024, %s5764_s26, %s5744_s7   ;;  %vm5723_vm1 = vcmask 7168  }
 0x278   : > { %s5885_s17 = sshll.u32 %s6319_s30, 3 }
 0x279   : > { %s239_s8 = scalar_lea.vmem %s7280_s4, %s5885_s17  ;;  %s243_s11 = scalar_lea.vmem %s7281_s5, %s5885_s17 }
 0x2f2   : > { %v5722_v1 = vpop.xlane.xlu1 %5721 }
 0x2f3   : > { %5724 = vst.msk [vmem:[%s239_s8] sm:$0xff] %vm5723_vm1, %v5722_v1 }
 0x2f4   : > { %v5741_v59 = vpop.xlane.xlu0 %5740 }
 0x2f5   : > { %5742 = vst.msk [vmem:[%s243_s11] sm:$0xff] %vm5723_vm1, %v5741_v59 }
 0x2f6 PF: > { %p6107_p13 = scmp.ge.s32.totalorder %s6220_s21, 2  ;;  %s5784_s28 = sand.u32 1, %s6208_s18  }
 0x2f7   : > { %s5785_s30 = scalar_lea.sflag [#allocation3], %s5784_s28 }
 0x2f8   : > { %p6104_p5 = pnand %p6107_p13, %p6311_p6 }
 0x2fa   : > { %p6105_p0 = pneg %p6104_p5 }
 0x2fc   : > { %6203 = dma.done.wait (%p6105_p0), %s5785_s30, 1024  }
 0x2fd   : > { %6205 = vsyncadd (%p6105_p0), %s5785_s30, 4294966272  ;;  %p16_p1 = scmp.ge.s32.totalorder %s6294_s24, 4   ;;  %s7310_s18 = smov %s6212_s19 }
 0x2fe   : > { %s7311_s19 = smov %s6216_s20  ;;  %s7312_s20 = smov %s6305_s27 }
 0x2ff   : > { %s7313_s21 = smov %s6294_s24  ;;  %18 = sbr.rel (!%p16_p1) target bundleno = 3 (0x3), region = 106 }
 0x304   :  { %5804 = vsyncpa [#allocation3], 1 }
 0x305   :  { %5806 = vsyncpa [#allocation3 + $0x1], 1 }

</bundles_post_ra>
